<compile_context>
chip_gen: v7x
topology: tpu7x:2x2x1
jax: 0.10.0
libtpu: 0.0.40
codegen_flags: <defaults>
</compile_context>

<pallas_src>
import jax
import jax.numpy as jnp
from jax import lax
from jax.experimental import pallas as pl
from jax.experimental.pallas import tpu as pltpu

BN_EPS = 1e-5


def _round_up(x, m):
    return (x + m - 1) // m * m


def _choose_bt(batch_calls, n, target_m=256):
    """Pick how many independent (n, F) chunks to fold into one grid step."""
    divisors = [d for d in range(1, batch_calls + 1) if batch_calls % d == 0]
    # Block second-minor dim (bt*n) must be a multiple of 8 sublanes unless the
    # block covers the whole axis.
    legal = [d for d in divisors if d == batch_calls or (d * n) % 8 == 0]
    fits = [d for d in legal if d * n <= target_m] or [min(legal)]
    # Keep >= 2 grid steps when possible so v7x megacore can shard the grid.
    multi = [d for d in fits if batch_calls // d >= 2]
    return max(multi) if multi else max(fits)


def _resident_spec(shape, single_buffer):
    """BlockSpec for a parameter that stays resident in VMEM across grid steps."""
    ndim = len(shape)
    index_map = lambda g: (0,) * ndim
    if single_buffer:
        # Constant index_map -> a single VMEM buffer is enough; halves the
        # resident-parameter footprint (matters on v7x's 64 MiB VMEM at real sizes).
        return pl.BlockSpec(shape, index_map, pipeline_mode=pl.Buffered(1))
    return pl.BlockSpec(shape, index_map)


def _make_kernel(num_hidden, bt, n, packed):
    """Kernel ref order:
        packed:   x, w0(F,H), vecs(L,3,H), [wrest(L-1,H,H) if L>=2], w_out, b_out, out
        unpacked: x, (w_i, vec_i)*L, w_out, b_out, out
    """
    m = bt * n

    def kernel(*refs):
        x_ref = refs[0]
        out_ref = refs[-1]
        b_out_ref = refs[-2]
        w_out_ref = refs[-3]
        mid = refs[1:-3]

        h = x_ref[...]                                   # (m, F) bf16, straight to MXU

        for i in range(num_hidden):
            if packed:
                w = mid[0][...] if i == 0 else mid[2][i - 1]     # (in, H) bf16
                b = mid[1][i, 0:1, :]                            # (1, H) f32
                g = mid[1][i, 1:2, :]
                be = mid[1][i, 2:3, :]
            else:
                w = mid[2 * i][...]
                b = mid[2 * i + 1][0:1, :]
                g = mid[2 * i + 1][1:2, :]
                be = mid[2 * i + 1][2:3, :]

            # Linear: bf16 operands on the MXU, f32 accumulation.
            z = jnp.dot(h, w, preferred_element_type=jnp.float32) + b
            a = jnp.tanh(z)                                       # f32, EUP

            # BatchNorm1d with per-call batch statistics: reshape (m,H)->(bt,n,H)
            # (n % 8 == 0 -> layout-free) and reduce over each call's batch axis,
            # affine fused into one FMA: h = a * scale + shift.
            hdim = a.shape[-1]
            a3 = a.reshape(bt, n, hdim)
            mean = jnp.mean(a3, axis=1, keepdims=True)            # (bt,1,H)
            var = jnp.mean(a3 * a3, axis=1, keepdims=True) - mean * mean
            scale = g * lax.rsqrt(var + BN_EPS)
            shift = be - mean * scale
            h = (a3 * scale + shift).reshape(m, hdim).astype(jnp.bfloat16)

        # Output linear layer; lane-padded bf16 -> unmasked full-lane store.
        pred = jnp.dot(h, w_out_ref[...], preferred_element_type=jnp.float32)
        pred = pred + b_out_ref[...]
        out_ref[...] = pred.astype(out_ref.dtype)

    return kernel


def mechanism_network_forward(x, params, categorical_output=False):
    """Forward pass.

    x: (N, F) -> one forward call, or (B, N, F) -> B independent forward calls.
       BN statistics are per (N, F) call regardless of how calls are folded
       into grid steps.
    params: dict with
      'w'     : list of (in, h) weights (transposed vs. PyTorch), f32
      'b'     : list of (1, h) biases
      'gamma' : list of (1, h) BN scales
      'beta'  : list of (1, h) BN shifts
      'w_out' : (h_last, out), 'b_out': (1, out)
    """
    squeeze = x.ndim == 2
    if squeeze:
        x = x[None]
    B, N, F = x.shape

    num_hidden = len(params["w"])
    hidden_dims = [int(w.shape[1]) for w in params["w"]]
    out_dim = int(params["w_out"].shape[1])
    out_pad = _round_up(out_dim, 128)

    bt = _choose_bt(B, N)
    grid = (B // bt,)
    m = bt * N

    # bf16 MXU inputs; x cast once in the wrapper (halves its DMA bytes).
    x_flat = x.reshape(B * N, F).astype(jnp.bfloat16)

    ws = [w.astype(jnp.bfloat16) for w in params["w"]]
    vec_list = [jnp.concatenate(
        [params["b"][i], params["gamma"][i], params["beta"][i]], axis=0)
        for i in range(num_hidden)]                      # (3, H_i) each, f32

    # Zero-pad the output layer along lanes to a multiple of 128 (lane-dense store).
    w_out = jnp.zeros((params["w_out"].shape[0], out_pad), jnp.bfloat16)
    w_out = w_out.at[:, :out_dim].set(params["w_out"].astype(jnp.bfloat16))
    b_out = jnp.zeros((1, out_pad), jnp.float32).at[:, :out_dim].set(params["b_out"])

    # Collapse per-layer params into few resident arrays when hidden dims are equal.
    packed = num_hidden > 0 and all(h == hidden_dims[0] for h in hidden_dims)
    inputs = [x_flat]
    resident_shapes = []
    if packed:
        vecs_arr = jnp.stack(vec_list, axis=0)           # (L, 3, H)
        inputs += [ws[0], vecs_arr]
        resident_shapes += [ws[0].shape, vecs_arr.shape]
        if num_hidden >= 2:
            wrest = jnp.stack(ws[1:], axis=0)            # (L-1, H, H)
            inputs += [wrest]
            resident_shapes += [wrest.shape]
    else:
        for w, v in zip(ws, vec_list):
            inputs += [w, v]
            resident_shapes += [w.shape, v.shape]
    inputs += [w_out, b_out]
    resident_shapes += [w_out.shape, b_out.shape]

    def build_specs(single_buffer):
        in_specs = [pl.BlockSpec((m, F), lambda g: (g, 0))]
        in_specs += [_resident_spec(s, single_buffer) for s in resident_shapes]
        out_specs = pl.BlockSpec((m, out_pad), lambda g: (g, 0))
        return in_specs, out_specs

    # VMEM budget from the actual working set (resident params + double-buffered
    # activation/out tiles + live f32 intermediates); 16 MiB floor, 48 MiB v7x cap.
    resident_bytes = sum(int(a.size) * jnp.dtype(a.dtype).itemsize for a in inputs[1:])
    h_max = max(hidden_dims + [out_pad, F])
    vmem_needed = (resident_bytes
                   + 2 * m * F * 2
                   + 2 * m * out_pad * 2
                   + 6 * m * h_max * 4)
    vmem_limit = int(min(max(2 * vmem_needed, 16 << 20), 48 << 20))

    # Cost estimate for XLA scheduling.
    dims = [F] + hidden_dims
    flops = 2 * B * N * sum(dims[i] * dims[i + 1] for i in range(num_hidden))
    flops += 2 * B * N * dims[-1] * out_pad
    transcendentals = B * N * sum(hidden_dims) + B * sum(hidden_dims)  # tanh + rsqrt
    bytes_accessed = int(x_flat.size) * 2 + resident_bytes + B * N * out_pad * 2

    kernel = _make_kernel(num_hidden, bt, N, packed)

    def run(single_buffer):
        in_specs, out_specs = build_specs(single_buffer)
        return pl.pallas_call(
            kernel,
            out_shape=jax.ShapeDtypeStruct((B * N, out_pad), jnp.bfloat16),
            grid_spec=pltpu.PrefetchScalarGridSpec(
                num_scalar_prefetch=0,
                grid=grid,
                in_specs=in_specs,
                out_specs=out_specs,
            ),
            compiler_params=pltpu.CompilerParams(
                dimension_semantics=("parallel",),       # megacore sharding on v7x
                vmem_limit_bytes=vmem_limit,
            ),
            cost_estimate=pl.CostEstimate(
                flops=int(flops),
                transcendentals=int(transcendentals),
                bytes_accessed=int(bytes_accessed),
            ),
        )(*inputs)

    try:
        pred_pad = run(single_buffer=True)
    except Exception:
        # pl.Buffered(1) not supported on this jax build -> default double-buffering.
        pred_pad = run(single_buffer=False)

    pred = pred_pad[:, :out_dim].astype(jnp.float32).reshape(B, N, out_dim)
    if squeeze:
        pred = pred[0]

    if categorical_output:
        y = jnp.argmax(pred, axis=-1)
        return y, pred
    return pred, None


def init_params(key, input_dim, output_dim, hidden_dims):
    """Deterministic parameter init (PyTorch Linear-style uniform bounds)."""
    params = {"w": [], "b": [], "gamma": [], "beta": []}
    inp = input_dim
    for h in hidden_dims:
        key, k1, k2 = jax.random.split(key, 3)
        bound = 1.0 / jnp.sqrt(inp)
        params["w"].append(
            jax.random.uniform(k1, (inp, h), jnp.float32, -bound, bound))
        params["b"].append(
            jax.random.uniform(k2, (1, h), jnp.float32, -bound, bound))
        params["gamma"].append(jnp.ones((1, h), jnp.float32))
        params["beta"].append(jnp.zeros((1, h), jnp.float32))
        inp = h
    key, k1, k2 = jax.random.split(key, 3)
    bound = 1.0 / jnp.sqrt(inp)
    params["w_out"] = jax.random.uniform(
        k1, (inp, output_dim), jnp.float32, -bound, bound)
    params["b_out"] = jax.random.uniform(
        k2, (1, output_dim), jnp.float32, -bound, bound)
    return params


def _reference_forward(x, params):
    """Pure-JAX reference mirroring the kernel numerics (bf16 MXU inputs, f32 math).

    x: (B, N, F); BN statistics per (N, F) call.
    """
    def one_chunk(xc):
        h = xc.astype(jnp.float32)
        for w, b, g, be in zip(params["w"], params["b"],
                               params["gamma"], params["beta"]):
            z = jnp.dot(h.astype(jnp.bfloat16), w.astype(jnp.bfloat16),
                        preferred_element_type=jnp.float32) + b
            a = jnp.tanh(z)
            mean = jnp.mean(a, axis=0, keepdims=True)
            var = jnp.mean(a * a, axis=0, keepdims=True) - mean * mean
            h = (a - mean) * (g * lax.rsqrt(var + BN_EPS)) + be
        return jnp.dot(h.astype(jnp.bfloat16),
                       params["w_out"].astype(jnp.bfloat16),
                       preferred_element_type=jnp.float32) + params["b_out"]

    return jax.vmap(one_chunk)(x)


if __name__ == "__main__":
    # B independent (batch, input_dim) forward calls; the wrapper folds 2 calls
    # per grid step (M = 64) and keeps a 2-step parallel grid.
    B, N, input_dim, output_dim = 4, 32, 16, 8
    hidden_dims = [32, 32]

    key = jax.random.PRNGKey(0)
    key, kx = jax.random.split(key)
    x = jax.random.normal(kx, (B, N, input_dim), jnp.float32)
    params = init_params(key, input_dim, output_dim, hidden_dims)

    # Stacked / gridded path.
    pred, _ = mechanism_network_forward(x, params, categorical_output=False)
    pred = jax.block_until_ready(pred)
    assert pred.shape == (B, N, output_dim)

    # Single-call (2-D input) + categorical path, exactly like the PyTorch module.
    y_cat, pred_cat = mechanism_network_forward(
        x[0], params, categorical_output=True)
    jax.block_until_ready((y_cat, pred_cat))
    assert y_cat.shape == (N,) and pred_cat.shape == (N, output_dim)

    # Correctness vs. pure-JAX reference (bf16 MXU inputs + bf16 output writeback
    # bound parity at ~1e-2).
    ref = _reference_forward(x, params)
    max_err = float(jnp.max(jnp.abs(pred - ref)))
    assert jnp.allclose(pred, ref, atol=1e-2, rtol=1e-2), max_err
    assert jnp.allclose(pred_cat, ref[0], atol=1e-2, rtol=1e-2)

    print("KERNEL_OK")
</pallas_src>

<mosaic_0001>
module attributes {stable_mosaic.version = 11 : i64} {
  func.func @kernel(%arg0: i32, %arg1: memref<64x16xbf16, #tpu.memory_space<vmem>>, %arg2: memref<16x32xbf16, #tpu.memory_space<vmem>>, %arg3: memref<2x3x32xf32, #tpu.memory_space<vmem>>, %arg4: memref<1x32x32xbf16, #tpu.memory_space<vmem>>, %arg5: memref<32x128xbf16, #tpu.memory_space<vmem>>, %arg6: memref<1x128xf32, #tpu.memory_space<vmem>>, %arg7: memref<64x128xbf16, #tpu.memory_space<vmem>>) attributes {dimension_semantics = [#tpu.dimension_semantics<parallel>], iteration_bounds = array<i64: 2>, scalar_prefetch = 0 : i64, scratch_operands = 0 : i64, tpu.core_type = #tpu.core_type<tc>, window_params = [{transform_indices = @transform_0, window_bounds = array<i64: 64, 16>}, {pipeline_mode = #tpu.pipeline_mode<synchronous>, transform_indices = @transform_1, window_bounds = array<i64: 16, 32>}, {pipeline_mode = #tpu.pipeline_mode<synchronous>, transform_indices = @transform_2, window_bounds = array<i64: 2, 3, 32>}, {pipeline_mode = #tpu.pipeline_mode<synchronous>, transform_indices = @transform_3, window_bounds = array<i64: 1, 32, 32>}, {pipeline_mode = #tpu.pipeline_mode<synchronous>, transform_indices = @transform_4, window_bounds = array<i64: 32, 128>}, {pipeline_mode = #tpu.pipeline_mode<synchronous>, transform_indices = @transform_5, window_bounds = array<i64: 1, 128>}, {transform_indices = @transform_6, window_bounds = array<i64: 64, 128>}]} {
    %c0 = arith.constant 0 : index
    %c0_0 = arith.constant 0 : index
    %0 = vector.load %arg1[%c0, %c0_0] : memref<64x16xbf16, #tpu.memory_space<vmem>>, vector<64x16xbf16>
    %c0_1 = arith.constant 0 : index
    %c0_2 = arith.constant 0 : index
    %1 = vector.load %arg2[%c0_1, %c0_2] : memref<16x32xbf16, #tpu.memory_space<vmem>>, vector<16x32xbf16>
    %c0_3 = arith.constant 0 : index
    %c0_4 = arith.constant 0 : index
    %c0_5 = arith.constant 0 : index
    %2 = vector.load %arg3[%c0_3, %c0_4, %c0_5] : memref<2x3x32xf32, #tpu.memory_space<vmem>>, vector<1x1x32xf32>
    %3 = vector.shape_cast %2 : vector<1x1x32xf32> to vector<1x32xf32>
    %c0_6 = arith.constant 0 : index
    %c1 = arith.constant 1 : index
    %c0_7 = arith.constant 0 : index
    %4 = vector.load %arg3[%c0_6, %c1, %c0_7] : memref<2x3x32xf32, #tpu.memory_space<vmem>>, vector<1x1x32xf32>
    %5 = vector.shape_cast %4 : vector<1x1x32xf32> to vector<1x32xf32>
    %c0_8 = arith.constant 0 : index
    %c2 = arith.constant 2 : index
    %c0_9 = arith.constant 0 : index
    %6 = vector.load %arg3[%c0_8, %c2, %c0_9] : memref<2x3x32xf32, #tpu.memory_space<vmem>>, vector<1x1x32xf32>
    %7 = vector.shape_cast %6 : vector<1x1x32xf32> to vector<1x32xf32>
    %cst = arith.constant dense<0.000000e+00> : vector<64x32xf32>
    %8 = tpu.matmul %0, %1, %cst {dimension_numbers = #tpu.dot_dimension_numbers<[1], [0], [0], [1], [0, 0, 1, 1], [], []>} : vector<64x16xbf16>, vector<16x32xbf16>, vector<64x32xf32> -> vector<64x32xf32>
    %9 = vector.broadcast %3 : vector<1x32xf32> to vector<64x32xf32>
    %10 = arith.addf %8, %9 : vector<64x32xf32>
    %11 = math.tanh %10 : vector<64x32xf32>
    %12 = vector.shape_cast %11 : vector<64x32xf32> to vector<2x32x32xf32>
    %cst_10 = arith.constant dense<0.000000e+00> : vector<2x32xf32>
    %13 = vector.multi_reduction <add>, %12, %cst_10 [1] : vector<2x32x32xf32> to vector<2x32xf32>
    %14 = vector.shape_cast %13 : vector<2x32xf32> to vector<2x1x32xf32>
    %cst_11 = arith.constant 3.200000e+01 : f32
    %15 = vector.broadcast %cst_11 : f32 to vector<2x1x32xf32>
    %16 = arith.divf %14, %15 : vector<2x1x32xf32>
    %17 = arith.mulf %12, %12 : vector<2x32x32xf32>
    %cst_12 = arith.constant dense<0.000000e+00> : vector<2x32xf32>
    %18 = vector.multi_reduction <add>, %17, %cst_12 [1] : vector<2x32x32xf32> to vector<2x32xf32>
    %19 = vector.shape_cast %18 : vector<2x32xf32> to vector<2x1x32xf32>
    %cst_13 = arith.constant 3.200000e+01 : f32
    %20 = vector.broadcast %cst_13 : f32 to vector<2x1x32xf32>
    %21 = arith.divf %19, %20 : vector<2x1x32xf32>
    %22 = arith.mulf %16, %16 : vector<2x1x32xf32>
    %23 = arith.subf %21, %22 : vector<2x1x32xf32>
    %cst_14 = arith.constant 9.99999974E-6 : f32
    %24 = vector.broadcast %cst_14 : f32 to vector<2x1x32xf32>
    %25 = arith.addf %23, %24 : vector<2x1x32xf32>
    %26 = math.rsqrt %25 : vector<2x1x32xf32>
    %27 = vector.shape_cast %5 : vector<1x32xf32> to vector<1x1x32xf32>
    %28 = vector.broadcast %27 : vector<1x1x32xf32> to vector<2x1x32xf32>
    %29 = arith.mulf %28, %26 : vector<2x1x32xf32>
    %30 = arith.mulf %16, %29 : vector<2x1x32xf32>
    %31 = vector.shape_cast %7 : vector<1x32xf32> to vector<1x1x32xf32>
    %32 = vector.broadcast %31 : vector<1x1x32xf32> to vector<2x1x32xf32>
    %33 = arith.subf %32, %30 : vector<2x1x32xf32>
    %34 = vector.broadcast %29 : vector<2x1x32xf32> to vector<2x32x32xf32>
    %35 = arith.mulf %12, %34 : vector<2x32x32xf32>
    %36 = vector.broadcast %33 : vector<2x1x32xf32> to vector<2x32x32xf32>
    %37 = arith.addf %35, %36 : vector<2x32x32xf32>
    %38 = vector.shape_cast %37 : vector<2x32x32xf32> to vector<64x32xf32>
    %39 = arith.truncf %38 : vector<64x32xf32> to vector<64x32xbf16>
    %c0_15 = arith.constant 0 : index
    %c0_16 = arith.constant 0 : index
    %c0_17 = arith.constant 0 : index
    %40 = vector.load %arg4[%c0_15, %c0_16, %c0_17] : memref<1x32x32xbf16, #tpu.memory_space<vmem>>, vector<1x32x32xbf16>
    %41 = vector.shape_cast %40 : vector<1x32x32xbf16> to vector<32x32xbf16>
    %c1_18 = arith.constant 1 : index
    %c0_19 = arith.constant 0 : index
    %c0_20 = arith.constant 0 : index
    %42 = vector.load %arg3[%c1_18, %c0_19, %c0_20] : memref<2x3x32xf32, #tpu.memory_space<vmem>>, vector<1x1x32xf32>
    %43 = vector.shape_cast %42 : vector<1x1x32xf32> to vector<1x32xf32>
    %c1_21 = arith.constant 1 : index
    %c1_22 = arith.constant 1 : index
    %c0_23 = arith.constant 0 : index
    %44 = vector.load %arg3[%c1_21, %c1_22, %c0_23] : memref<2x3x32xf32, #tpu.memory_space<vmem>>, vector<1x1x32xf32>
    %45 = vector.shape_cast %44 : vector<1x1x32xf32> to vector<1x32xf32>
    %c1_24 = arith.constant 1 : index
    %c2_25 = arith.constant 2 : index
    %c0_26 = arith.constant 0 : index
    %46 = vector.load %arg3[%c1_24, %c2_25, %c0_26] : memref<2x3x32xf32, #tpu.memory_space<vmem>>, vector<1x1x32xf32>
    %47 = vector.shape_cast %46 : vector<1x1x32xf32> to vector<1x32xf32>
    %cst_27 = arith.constant dense<0.000000e+00> : vector<64x32xf32>
    %48 = tpu.matmul %39, %41, %cst_27 {dimension_numbers = #tpu.dot_dimension_numbers<[1], [0], [0], [1], [0, 0, 1, 1], [], []>} : vector<64x32xbf16>, vector<32x32xbf16>, vector<64x32xf32> -> vector<64x32xf32>
    %49 = vector.broadcast %43 : vector<1x32xf32> to vector<64x32xf32>
    %50 = arith.addf %48, %49 : vector<64x32xf32>
    %51 = math.tanh %50 : vector<64x32xf32>
    %52 = vector.shape_cast %51 : vector<64x32xf32> to vector<2x32x32xf32>
    %cst_28 = arith.constant dense<0.000000e+00> : vector<2x32xf32>
    %53 = vector.multi_reduction <add>, %52, %cst_28 [1] : vector<2x32x32xf32> to vector<2x32xf32>
    %54 = vector.shape_cast %53 : vector<2x32xf32> to vector<2x1x32xf32>
    %cst_29 = arith.constant 3.200000e+01 : f32
    %55 = vector.broadcast %cst_29 : f32 to vector<2x1x32xf32>
    %56 = arith.divf %54, %55 : vector<2x1x32xf32>
    %57 = arith.mulf %52, %52 : vector<2x32x32xf32>
    %cst_30 = arith.constant dense<0.000000e+00> : vector<2x32xf32>
    %58 = vector.multi_reduction <add>, %57, %cst_30 [1] : vector<2x32x32xf32> to vector<2x32xf32>
    %59 = vector.shape_cast %58 : vector<2x32xf32> to vector<2x1x32xf32>
    %cst_31 = arith.constant 3.200000e+01 : f32
    %60 = vector.broadcast %cst_31 : f32 to vector<2x1x32xf32>
    %61 = arith.divf %59, %60 : vector<2x1x32xf32>
    %62 = arith.mulf %56, %56 : vector<2x1x32xf32>
    %63 = arith.subf %61, %62 : vector<2x1x32xf32>
    %cst_32 = arith.constant 9.99999974E-6 : f32
    %64 = vector.broadcast %cst_32 : f32 to vector<2x1x32xf32>
    %65 = arith.addf %63, %64 : vector<2x1x32xf32>
    %66 = math.rsqrt %65 : vector<2x1x32xf32>
    %67 = vector.shape_cast %45 : vector<1x32xf32> to vector<1x1x32xf32>
    %68 = vector.broadcast %67 : vector<1x1x32xf32> to vector<2x1x32xf32>
    %69 = arith.mulf %68, %66 : vector<2x1x32xf32>
    %70 = arith.mulf %56, %69 : vector<2x1x32xf32>
    %71 = vector.shape_cast %47 : vector<1x32xf32> to vector<1x1x32xf32>
    %72 = vector.broadcast %71 : vector<1x1x32xf32> to vector<2x1x32xf32>
    %73 = arith.subf %72, %70 : vector<2x1x32xf32>
    %74 = vector.broadcast %69 : vector<2x1x32xf32> to vector<2x32x32xf32>
    %75 = arith.mulf %52, %74 : vector<2x32x32xf32>
    %76 = vector.broadcast %73 : vector<2x1x32xf32> to vector<2x32x32xf32>
    %77 = arith.addf %75, %76 : vector<2x32x32xf32>
    %78 = vector.shape_cast %77 : vector<2x32x32xf32> to vector<64x32xf32>
    %79 = arith.truncf %78 : vector<64x32xf32> to vector<64x32xbf16>
    %c0_33 = arith.constant 0 : index
    %c0_34 = arith.constant 0 : index
    %80 = vector.load %arg5[%c0_33, %c0_34] : memref<32x128xbf16, #tpu.memory_space<vmem>>, vector<32x128xbf16>
    %cst_35 = arith.constant dense<0.000000e+00> : vector<64x128xf32>
    %81 = tpu.matmul %79, %80, %cst_35 {dimension_numbers = #tpu.dot_dimension_numbers<[1], [0], [0], [1], [0, 0, 1, 1], [], []>} : vector<64x32xbf16>, vector<32x128xbf16>, vector<64x128xf32> -> vector<64x128xf32>
    %c0_36 = arith.constant 0 : index
    %c0_37 = arith.constant 0 : index
    %82 = vector.load %arg6[%c0_36, %c0_37] : memref<1x128xf32, #tpu.memory_space<vmem>>, vector<1x128xf32>
    %83 = vector.broadcast %82 : vector<1x128xf32> to vector<64x128xf32>
    %84 = arith.addf %81, %83 : vector<64x128xf32>
    %85 = arith.truncf %84 : vector<64x128xf32> to vector<64x128xbf16>
    %c0_38 = arith.constant 0 : index
    %c0_39 = arith.constant 0 : index
    %86 = vector.load %arg7[%c0_38, %c0_39] : memref<64x128xbf16, #tpu.memory_space<vmem>>, vector<64x128xbf16>
    tpu.vector_store %arg7[%c0_38, %c0_39], %85 {strides = array<i32>} : memref<64x128xbf16, #tpu.memory_space<vmem>>, vector<64x128xbf16>,
    return
  }
  func.func @transform_0(%arg0: i32) -> (i32, i32) {
    %c0_i32 = arith.constant 0 : i32
    %c0_i32_0 = arith.constant 0 : i32
    return %arg0, %c0_i32 : i32, i32
  }
  func.func @transform_1(%arg0: i32) -> (i32, i32) {
    %c0_i32 = arith.constant 0 : i32
    %c0_i32_0 = arith.constant 0 : i32
    %c0_i32_1 = arith.constant 0 : i32
    return %c0_i32, %c0_i32_0 : i32, i32
  }
  func.func @transform_2(%arg0: i32) -> (i32, i32, i32) {
    %c0_i32 = arith.constant 0 : i32
    %c0_i32_0 = arith.constant 0 : i32
    %c0_i32_1 = arith.constant 0 : i32
    %c0_i32_2 = arith.constant 0 : i32
    return %c0_i32, %c0_i32_0, %c0_i32_1 : i32, i32, i32
  }
  func.func @transform_3(%arg0: i32) -> (i32, i32, i32) {
    %c0_i32 = arith.constant 0 : i32
    %c0_i32_0 = arith.constant 0 : i32
    %c0_i32_1 = arith.constant 0 : i32
    %c0_i32_2 = arith.constant 0 : i32
    return %c0_i32, %c0_i32_0, %c0_i32_1 : i32, i32, i32
  }
  func.func @transform_4(%arg0: i32) -> (i32, i32) {
    %c0_i32 = arith.constant 0 : i32
    %c0_i32_0 = arith.constant 0 : i32
    %c0_i32_1 = arith.constant 0 : i32
    return %c0_i32, %c0_i32_0 : i32, i32
  }
  func.func @transform_5(%arg0: i32) -> (i32, i32) {
    %c0_i32 = arith.constant 0 : i32
    %c0_i32_0 = arith.constant 0 : i32
    %c0_i32_1 = arith.constant 0 : i32
    return %c0_i32, %c0_i32_0 : i32, i32
  }
  func.func @transform_6(%arg0: i32) -> (i32, i32) {
    %c0_i32 = arith.constant 0 : i32
    %c0_i32_0 = arith.constant 0 : i32
    return %arg0, %c0_i32 : i32, i32
  }
}

module attributes {stable_mosaic.version = 11 : i64} {
  func.func @kernel(%arg0: i32, %arg1: memref<64x16xbf16, #tpu.memory_space<vmem>>, %arg2: memref<16x32xbf16, #tpu.memory_space<vmem>>, %arg3: memref<2x3x32xf32, #tpu.memory_space<vmem>>, %arg4: memref<1x32x32xbf16, #tpu.memory_space<vmem>>, %arg5: memref<32x128xbf16, #tpu.memory_space<vmem>>, %arg6: memref<1x128xf32, #tpu.memory_space<vmem>>, %arg7: memref<64x128xbf16, #tpu.memory_space<vmem>>) attributes {dimension_semantics = [#tpu.dimension_semantics<parallel>], iteration_bounds = array<i64: 2>, scalar_prefetch = 0 : i64, scratch_operands = 0 : i64, tpu.core_type = #tpu.core_type<tc>, window_params = [{transform_indices = @transform_0, window_bounds = array<i64: 64, 16>}, {pipeline_mode = #tpu.pipeline_mode<synchronous>, transform_indices = @transform_1, window_bounds = array<i64: 16, 32>}, {pipeline_mode = #tpu.pipeline_mode<synchronous>, transform_indices = @transform_2, window_bounds = array<i64: 2, 3, 32>}, {pipeline_mode = #tpu.pipeline_mode<synchronous>, transform_indices = @transform_3, window_bounds = array<i64: 1, 32, 32>}, {pipeline_mode = #tpu.pipeline_mode<synchronous>, transform_indices = @transform_4, window_bounds = array<i64: 32, 128>}, {pipeline_mode = #tpu.pipeline_mode<synchronous>, transform_indices = @transform_5, window_bounds = array<i64: 1, 128>}, {transform_indices = @transform_6, window_bounds = array<i64: 64, 128>}]} {
    %c0 = arith.constant 0 : index
    %c0_0 = arith.constant 0 : index
    %0 = vector.load %arg1[%c0, %c0_0] : memref<64x16xbf16, #tpu.memory_space<vmem>>, vector<64x16xbf16>
    %c0_1 = arith.constant 0 : index
    %c0_2 = arith.constant 0 : index
    %1 = vector.load %arg2[%c0_1, %c0_2] : memref<16x32xbf16, #tpu.memory_space<vmem>>, vector<16x32xbf16>
    %c0_3 = arith.constant 0 : index
    %c0_4 = arith.constant 0 : index
    %c0_5 = arith.constant 0 : index
    %2 = vector.load %arg3[%c0_3, %c0_4, %c0_5] : memref<2x3x32xf32, #tpu.memory_space<vmem>>, vector<1x1x32xf32>
    %3 = vector.shape_cast %2 : vector<1x1x32xf32> to vector<1x32xf32>
    %c0_6 = arith.constant 0 : index
    %c1 = arith.constant 1 : index
    %c0_7 = arith.constant 0 : index
    %4 = vector.load %arg3[%c0_6, %c1, %c0_7] : memref<2x3x32xf32, #tpu.memory_space<vmem>>, vector<1x1x32xf32>
    %5 = vector.shape_cast %4 : vector<1x1x32xf32> to vector<1x32xf32>
    %c0_8 = arith.constant 0 : index
    %c2 = arith.constant 2 : index
    %c0_9 = arith.constant 0 : index
    %6 = vector.load %arg3[%c0_8, %c2, %c0_9] : memref<2x3x32xf32, #tpu.memory_space<vmem>>, vector<1x1x32xf32>
    %7 = vector.shape_cast %6 : vector<1x1x32xf32> to vector<1x32xf32>
    %cst = arith.constant dense<0.000000e+00> : vector<64x32xf32>
    %8 = tpu.matmul %0, %1, %cst {dimension_numbers = #tpu.dot_dimension_numbers<[1], [0], [0], [1], [0, 0, 1, 1], [], []>} : vector<64x16xbf16>, vector<16x32xbf16>, vector<64x32xf32> -> vector<64x32xf32>
    %9 = vector.broadcast %3 : vector<1x32xf32> to vector<64x32xf32>
    %10 = arith.addf %8, %9 : vector<64x32xf32>
    %11 = math.tanh %10 : vector<64x32xf32>
    %12 = vector.shape_cast %11 : vector<64x32xf32> to vector<2x32x32xf32>
    %cst_10 = arith.constant dense<0.000000e+00> : vector<2x32xf32>
    %13 = vector.multi_reduction <add>, %12, %cst_10 [1] : vector<2x32x32xf32> to vector<2x32xf32>
    %14 = vector.shape_cast %13 : vector<2x32xf32> to vector<2x1x32xf32>
    %cst_11 = arith.constant 3.200000e+01 : f32
    %15 = vector.broadcast %cst_11 : f32 to vector<2x1x32xf32>
    %16 = arith.divf %14, %15 : vector<2x1x32xf32>
    %17 = arith.mulf %12, %12 : vector<2x32x32xf32>
    %cst_12 = arith.constant dense<0.000000e+00> : vector<2x32xf32>
    %18 = vector.multi_reduction <add>, %17, %cst_12 [1] : vector<2x32x32xf32> to vector<2x32xf32>
    %19 = vector.shape_cast %18 : vector<2x32xf32> to vector<2x1x32xf32>
    %cst_13 = arith.constant 3.200000e+01 : f32
    %20 = vector.broadcast %cst_13 : f32 to vector<2x1x32xf32>
    %21 = arith.divf %19, %20 : vector<2x1x32xf32>
    %22 = arith.mulf %16, %16 : vector<2x1x32xf32>
    %23 = arith.subf %21, %22 : vector<2x1x32xf32>
    %cst_14 = arith.constant 9.99999974E-6 : f32
    %24 = vector.broadcast %cst_14 : f32 to vector<2x1x32xf32>
    %25 = arith.addf %23, %24 : vector<2x1x32xf32>
    %26 = math.rsqrt %25 : vector<2x1x32xf32>
    %27 = vector.shape_cast %5 : vector<1x32xf32> to vector<1x1x32xf32>
    %28 = vector.broadcast %27 : vector<1x1x32xf32> to vector<2x1x32xf32>
    %29 = arith.mulf %28, %26 : vector<2x1x32xf32>
    %30 = arith.mulf %16, %29 : vector<2x1x32xf32>
    %31 = vector.shape_cast %7 : vector<1x32xf32> to vector<1x1x32xf32>
    %32 = vector.broadcast %31 : vector<1x1x32xf32> to vector<2x1x32xf32>
    %33 = arith.subf %32, %30 : vector<2x1x32xf32>
    %34 = vector.broadcast %29 : vector<2x1x32xf32> to vector<2x32x32xf32>
    %35 = arith.mulf %12, %34 : vector<2x32x32xf32>
    %36 = vector.broadcast %33 : vector<2x1x32xf32> to vector<2x32x32xf32>
    %37 = arith.addf %35, %36 : vector<2x32x32xf32>
    %38 = vector.shape_cast %37 : vector<2x32x32xf32> to vector<64x32xf32>
    %39 = arith.truncf %38 : vector<64x32xf32> to vector<64x32xbf16>
    %c0_15 = arith.constant 0 : index
    %c0_16 = arith.constant 0 : index
    %c0_17 = arith.constant 0 : index
    %40 = vector.load %arg4[%c0_15, %c0_16, %c0_17] : memref<1x32x32xbf16, #tpu.memory_space<vmem>>, vector<1x32x32xbf16>
    %41 = vector.shape_cast %40 : vector<1x32x32xbf16> to vector<32x32xbf16>
    %c1_18 = arith.constant 1 : index
    %c0_19 = arith.constant 0 : index
    %c0_20 = arith.constant 0 : index
    %42 = vector.load %arg3[%c1_18, %c0_19, %c0_20] : memref<2x3x32xf32, #tpu.memory_space<vmem>>, vector<1x1x32xf32>
    %43 = vector.shape_cast %42 : vector<1x1x32xf32> to vector<1x32xf32>
    %c1_21 = arith.constant 1 : index
    %c1_22 = arith.constant 1 : index
    %c0_23 = arith.constant 0 : index
    %44 = vector.load %arg3[%c1_21, %c1_22, %c0_23] : memref<2x3x32xf32, #tpu.memory_space<vmem>>, vector<1x1x32xf32>
    %45 = vector.shape_cast %44 : vector<1x1x32xf32> to vector<1x32xf32>
    %c1_24 = arith.constant 1 : index
    %c2_25 = arith.constant 2 : index
    %c0_26 = arith.constant 0 : index
    %46 = vector.load %arg3[%c1_24, %c2_25, %c0_26] : memref<2x3x32xf32, #tpu.memory_space<vmem>>, vector<1x1x32xf32>
    %47 = vector.shape_cast %46 : vector<1x1x32xf32> to vector<1x32xf32>
    %cst_27 = arith.constant dense<0.000000e+00> : vector<64x32xf32>
    %48 = tpu.matmul %39, %41, %cst_27 {dimension_numbers = #tpu.dot_dimension_numbers<[1], [0], [0], [1], [0, 0, 1, 1], [], []>} : vector<64x32xbf16>, vector<32x32xbf16>, vector<64x32xf32> -> vector<64x32xf32>
    %49 = vector.broadcast %43 : vector<1x32xf32> to vector<64x32xf32>
    %50 = arith.addf %48, %49 : vector<64x32xf32>
    %51 = math.tanh %50 : vector<64x32xf32>
    %52 = vector.shape_cast %51 : vector<64x32xf32> to vector<2x32x32xf32>
    %cst_28 = arith.constant dense<0.000000e+00> : vector<2x32xf32>
    %53 = vector.multi_reduction <add>, %52, %cst_28 [1] : vector<2x32x32xf32> to vector<2x32xf32>
    %54 = vector.shape_cast %53 : vector<2x32xf32> to vector<2x1x32xf32>
    %cst_29 = arith.constant 3.200000e+01 : f32
    %55 = vector.broadcast %cst_29 : f32 to vector<2x1x32xf32>
    %56 = arith.divf %54, %55 : vector<2x1x32xf32>
    %57 = arith.mulf %52, %52 : vector<2x32x32xf32>
    %cst_30 = arith.constant dense<0.000000e+00> : vector<2x32xf32>
    %58 = vector.multi_reduction <add>, %57, %cst_30 [1] : vector<2x32x32xf32> to vector<2x32xf32>
    %59 = vector.shape_cast %58 : vector<2x32xf32> to vector<2x1x32xf32>
    %cst_31 = arith.constant 3.200000e+01 : f32
    %60 = vector.broadcast %cst_31 : f32 to vector<2x1x32xf32>
    %61 = arith.divf %59, %60 : vector<2x1x32xf32>
    %62 = arith.mulf %56, %56 : vector<2x1x32xf32>
    %63 = arith.subf %61, %62 : vector<2x1x32xf32>
    %cst_32 = arith.constant 9.99999974E-6 : f32
    %64 = vector.broadcast %cst_32 : f32 to vector<2x1x32xf32>
    %65 = arith.addf %63, %64 : vector<2x1x32xf32>
    %66 = math.rsqrt %65 : vector<2x1x32xf32>
    %67 = vector.shape_cast %45 : vector<1x32xf32> to vector<1x1x32xf32>
    %68 = vector.broadcast %67 : vector<1x1x32xf32> to vector<2x1x32xf32>
    %69 = arith.mulf %68, %66 : vector<2x1x32xf32>
    %70 = arith.mulf %56, %69 : vector<2x1x32xf32>
    %71 = vector.shape_cast %47 : vector<1x32xf32> to vector<1x1x32xf32>
    %72 = vector.broadcast %71 : vector<1x1x32xf32> to vector<2x1x32xf32>
    %73 = arith.subf %72, %70 : vector<2x1x32xf32>
    %74 = vector.broadcast %69 : vector<2x1x32xf32> to vector<2x32x32xf32>
    %75 = arith.mulf %52, %74 : vector<2x32x32xf32>
    %76 = vector.broadcast %73 : vector<2x1x32xf32> to vector<2x32x32xf32>
    %77 = arith.addf %75, %76 : vector<2x32x32xf32>
    %78 = vector.shape_cast %77 : vector<2x32x32xf32> to vector<64x32xf32>
    %79 = arith.truncf %78 : vector<64x32xf32> to vector<64x32xbf16>
    %c0_33 = arith.constant 0 : index
    %c0_34 = arith.constant 0 : index
    %80 = vector.load %arg5[%c0_33, %c0_34] : memref<32x128xbf16, #tpu.memory_space<vmem>>, vector<32x128xbf16>
    %cst_35 = arith.constant dense<0.000000e+00> : vector<64x128xf32>
    %81 = tpu.matmul %79, %80, %cst_35 {dimension_numbers = #tpu.dot_dimension_numbers<[1], [0], [0], [1], [0, 0, 1, 1], [], []>} : vector<64x32xbf16>, vector<32x128xbf16>, vector<64x128xf32> -> vector<64x128xf32>
    %c0_36 = arith.constant 0 : index
    %c0_37 = arith.constant 0 : index
    %82 = vector.load %arg6[%c0_36, %c0_37] : memref<1x128xf32, #tpu.memory_space<vmem>>, vector<1x128xf32>
    %83 = vector.broadcast %82 : vector<1x128xf32> to vector<64x128xf32>
    %84 = arith.addf %81, %83 : vector<64x128xf32>
    %85 = arith.truncf %84 : vector<64x128xf32> to vector<64x128xbf16>
    %c0_38 = arith.constant 0 : index
    %c0_39 = arith.constant 0 : index
    %86 = vector.load %arg7[%c0_38, %c0_39] : memref<64x128xbf16, #tpu.memory_space<vmem>>, vector<64x128xbf16>
    tpu.vector_store %arg7[%c0_38, %c0_39], %85 {strides = array<i32>} : memref<64x128xbf16, #tpu.memory_space<vmem>>, vector<64x128xbf16>,
    return
  }
  func.func @transform_0(%arg0: i32) -> (i32, i32) {
    %c0_i32 = arith.constant 0 : i32
    %c0_i32_0 = arith.constant 0 : i32
    return %arg0, %c0_i32 : i32, i32
  }
  func.func @transform_1(%arg0: i32) -> (i32, i32) {
    %c0_i32 = arith.constant 0 : i32
    %c0_i32_0 = arith.constant 0 : i32
    %c0_i32_1 = arith.constant 0 : i32
    return %c0_i32, %c0_i32_0 : i32, i32
  }
  func.func @transform_2(%arg0: i32) -> (i32, i32, i32) {
    %c0_i32 = arith.constant 0 : i32
    %c0_i32_0 = arith.constant 0 : i32
    %c0_i32_1 = arith.constant 0 : i32
    %c0_i32_2 = arith.constant 0 : i32
    return %c0_i32, %c0_i32_0, %c0_i32_1 : i32, i32, i32
  }
  func.func @transform_3(%arg0: i32) -> (i32, i32, i32) {
    %c0_i32 = arith.constant 0 : i32
    %c0_i32_0 = arith.constant 0 : i32
    %c0_i32_1 = arith.constant 0 : i32
    %c0_i32_2 = arith.constant 0 : i32
    return %c0_i32, %c0_i32_0, %c0_i32_1 : i32, i32, i32
  }
  func.func @transform_4(%arg0: i32) -> (i32, i32) {
    %c0_i32 = arith.constant 0 : i32
    %c0_i32_0 = arith.constant 0 : i32
    %c0_i32_1 = arith.constant 0 : i32
    return %c0_i32, %c0_i32_0 : i32, i32
  }
  func.func @transform_5(%arg0: i32) -> (i32, i32) {
    %c0_i32 = arith.constant 0 : i32
    %c0_i32_0 = arith.constant 0 : i32
    %c0_i32_1 = arith.constant 0 : i32
    return %c0_i32, %c0_i32_0 : i32, i32
  }
  func.func @transform_6(%arg0: i32) -> (i32, i32) {
    %c0_i32 = arith.constant 0 : i32
    %c0_i32_0 = arith.constant 0 : i32
    return %arg0, %c0_i32 : i32, i32
  }
}

</mosaic_0001>

<bundles_post_ra>
// kernel: tpu_custom_call.1
= control target key start
LH: loop header
LB: loop body
LE: loop exit
PB: predicated region body
PF: predicated region fallthrough
CT: control target
= control target key end

     0   :  { %11 = vsyncpa [#allocation3], 0  ;;  %s1550_s0 = inlined_call_operand.vmem [shape: bf16[128,16], index: 0, kind: input, shape index: {}]   ;;  %s1551_s1 = inlined_call_operand.vmem [shape: bf16[16,32], index: 1, kind: input, shape index: {}]   ;;  %s1552_s2 = inlined_call_operand.vmem [shape: f32[2,3,32], index: 2, kind: input, shape index: {}]   ;;  %s1553_s3 = inlined_call_operand.vmem [shape: bf16[1,32,32], index: 3, kind: input, shape index: {}]   ;;  %s1554_s4 = inlined_call_operand.vmem [shape: bf16[32,128], index: 4, kind: input, shape index: {}]   ;;  %s1555_s5 = inlined_call_operand.vmem [shape: f32[1,128], index: 5, kind: input, shape index: {}]   ;;  %s1556_s6 = inlined_call_operand.hbm [shape: bf16[128,128], index: 6, kind: output, shape index: {}]  }
   0x1   :  { %13 = vsyncpa [#allocation3 + $0x1], 0  ;;  %s1262_s21 = smov 0   ;;  %s1264_s22 = smov 0  }
   0x2   :  { %s1266_s23 = smov 0   ;;  %s1268_s24 = smov 0  }
   0x3 LB: > { %s1283_s25 = sadd.s32 4294967295, %s1222_s24   ;;  %s938_s26 = sadd.s32 4294967294, %s1222_s24   ;;  %s1222_s24 = sphi %s1268_s24, %s1562_s24   ;;  %s1218_s23 = sphi %s1266_s23, %s1561_s23   ;;  %s1214_s22 = sphi %s1264_s22, %s1560_s22   ;;  %s1210_s21 = sphi %s1262_s21, %s1559_s21  }
   0x4   : > { %s1287_s27 = sadd.s32 1, %s1222_s24   ;;  %s157_s28 = sadd.s32 1, %s1218_s23 }
   0x5   : > { %s154_s29 = ssub.s32 %s1222_s24, %s1287_s27  ;;  %p167_p0 = scmp.ne.s32.totalorder %s1218_s23, %s1214_s22 }
   0x6   : > { %p155_p1 = scmp.eq.s32.totalorder %s154_s29, 0  ;;  %p168_p2 = scmp.eq.s32.totalorder %s1283_s25, 1 }
   0x7   : > { %p173_p3 = scmp.ne.s32.totalorder %s1214_s22, %s1210_s21  ;;  %p174_p4 = scmp.eq.s32.totalorder %s938_s26, 1 }
   0x8   : > { %s1298_s30 = scalar_select %p155_p1, %s1218_s23, %s157_s28  }
   0x9   : > { %p1300_p5 = por %p168_p2, %p167_p0  ;;  %p1304_p6 = por %p174_p4, %p173_p3 }
   0xa   : > { %p941_p7 = scmp.ge.s32.totalorder %s1222_s24, 1  ;;  %p216_p8 = scmp.lt.s32.totalorder %s1222_s24, 3 }
   0xc   : > { %p217_p9 = pnand %p941_p7, %p216_p8 }
   0xd   : > { %v1111_v0 = vld [vmem:[%s1551_s1] sm:$0xff] (!%p217_p9)   ;;  %s943_s11 = sshll.u32 (!%p217_p9), %s1283_s25, 3  ;;  %vm297_vm0 = vcmask (!%p217_p9), 130048   ;;  %v1117_v6 = vld [vmem:[%s1553_s3 + $0x8] sm:$0xff] (!%p217_p9)   ;;  %vm383_vm1 = vcmask (!%p217_p9), 261120   ;;  %s243_s26 = sand.u32 (!%p217_p9), 1, %s1214_s22  }
   0xe   : > { %220 = sbr.rel (%p217_p9) target bundleno = 829 (0x33d), region = 44  ;;  %p247_p10 = scmp.lt.s32.totalorder (!%p217_p9), %s943_s11, 15  ;;  %1034 = vmatprep.subr.bf16.mxu0 (!%p217_p9), %v1111_v0  ;;  %1068 = vmatprep.subr.bf16.mxu1 (!%p217_p9), %v1111_v0  ;;  %v1116_v5 = vld [vmem:[%s1553_s3] sm:$0xff] (!%p217_p9)  }
   0xf   : > { %1035 = vmatpush3.bf16.msra.mxu0 (!%p217_p9), %v1111_v0  ;;  %1069 = vmatpush3.bf16.msra.mxu1 (!%p217_p9), %v1111_v0  ;;  %v945_v7 = vld [vmem:[%s1552_s2] ss:$0 sm:$0xff] (!%p217_p9)  ;;  %s942_s9 = sshll.u32 (!%p217_p9), %s243_s26, 5  ;;  %s1509_s16 = scalar_lea.sflag (!%p217_p9), [#allocation3], %s243_s26 }
  0x10   : > { %1044 = vmatprep.subr.bf16.mxu1 (!%p217_p9), %v1116_v5  ;;  %s245_s10 = scalar_lea.vmem (!%p217_p9), [#allocation2], %s942_s9  ;;  %s1224_s17 = smov (!%p217_p9), [#allocation2]  }
  0x11   : > { %s1164_s18 = sshll.u32 (!%p217_p9), %s1224_s17, 4  ;;  %s1165_s18 = int_to_ptr.vmem [resolvable:$false] %s1164_s18 }
  0x12   : > { %s1166_s19 = scalar_lea.vmem (!%p217_p9), %s1165_s18, 1024 }
  0x15   : > { %s1564_s11 = smov (!%p247_p10, %s943_s11), 15 }
  0x16   : > { %s944_s12 = sshll.u32 %s1564_s11, 2  ;;  %s876_s11 = sshll.u32 %s245_s10, 4  ;;  %s1500_s11 = int_to_ptr.vmem [resolvable:$true] %s876_s11 }
  0x17   : > { %s250_s15 = scalar_lea.vmem %s1550_s0, %s944_s12  ;;  %s993_s12 = sshll.u32 %s1283_s25, 9 }
  0x18   : > { %v1112_v1 = vld [vmem:[%s250_s15] sm:$0xff]   ;;  %v1113_v2 = vld [vmem:[%s250_s15 + $0x10] sm:$0xff]   ;;  %v1114_v3 = vld [vmem:[%s250_s15 + $0x8] sm:$0xff]   ;;  %s1160_s25 = scalar_lea.vmem %s1500_s11, 512  ;;  %p1167_p0 = scmp.lt.s32.totalorder %s1500_s11, %s1165_s18 }
  0x19   : > { %1036 = vmatprep.mubr.msk.bf16.mxu0 %vm297_vm0, %v1112_v1  ;;  %1040 = vmatprep.mubr.msk.bf16.mxu1 %vm297_vm0, %v1113_v2  ;;  %v1115_v4 = vld [vmem:[%s250_s15 + $0x18] sm:$0xff]   ;;  %s1505_s15 = scalar_lea.hbm %s1556_s6, %s993_s12  ;;  %p1161_p11 = scmp.ne.s32.totalorder %s1500_s11, %s1160_s25 }
  0x1a   : > { %1037 = vmatmul.mubr.msk.bf16.vlgmr.msra.gmra.mrb[0].mxu0 %vm297_vm0, %v1114_v3  ;;  %1041 = vmatmul.mubr.msk.bf16.vlgmr.msra.gmra.mrb[0].mxu1 %vm297_vm0, %v1115_v4  ;;  %p1168_p1 = scmp.lt.s32.totalorder %s1166_s19, %s1160_s25 }
  0x1b   : > { %1045 = vmatpush3.bf16.msra.mxu1 %v1116_v5  ;;  %p1162_p12 = pnand %p1161_p11, %p1300_p5 }
  0x1c   : > { %1046 = vmatprep.subr.bf16.mxu1 %v1117_v6  ;;  %p1169_p2 = por %p1168_p1, %p1167_p0 }
  0x1d   : > { %p1163_p13 = pneg %p1162_p12 }
  0x1f   : > { %1047 = vmatpush3.bf16.msra.mxu1 %v1117_v6  ;;  %p1170_p3 = pnand %p1169_p2, %p1163_p13 }
  0xed   : > { %v1038_v8 = vpop.f32.mrb[0].mxu0  ;;  %v1042_v10 = vpop.f32.mrb[0].mxu1 }
  0xee   : > { %v353_v9 = vadd.f32 %v1038_v8, %v945_v7  ;;  %v344_v11 = vpop.f32.mrb[1].mxu0  ;;  %v369_v12 = vadd.f32 %v1042_v10, %v945_v7  ;;  %v360_v14 = vpop.f32.mrb[1].mxu1 }
  0xef   : > { %v345_v13 = vadd.f32 %v945_v7, %v344_v11  ;;  %v1039_v15 = vpop.f32.mrb[2].mxu0  ;;  %v361_v16 = vadd.f32 %v945_v7, %v360_v14  ;;  %v1043_v18 = vpop.f32.mrb[2].mxu1 }
  0xf0   : > { %1120 = vtanh.f32 %v353_v9  ;;  %v356_v17 = vadd.f32 %v1039_v15, %v945_v7  ;;  %v347_v19 = vpop.f32.mrb[3].mxu0  ;;  %v372_v20 = vadd.f32 %v1043_v18, %v945_v7  ;;  %v363_v21 = vpop.f32.mrb[3].mxu1 }
  0xf1   : > { %1122 = vtanh.f32 %v369_v12  ;;  %v348_v22 = vadd.f32 %v945_v7, %v347_v19  ;;  %v364_v23 = vadd.f32 %v945_v7, %v363_v21 }
  0xf2   : > { %1124 = vtanh.f32 %v345_v13 }
  0xf3   : > { %1126 = vtanh.f32 %v361_v16 }
  0xf4   : > { %1128 = vtanh.f32 %v356_v17 }
  0xf5   : > { %1130 = vtanh.f32 %v372_v20 }
  0xf6   : > { %1132 = vtanh.f32 %v348_v22 }
  0xf7   : > { %1134 = vtanh.f32 %v364_v23 }
  0xfa   : > { %v1326_v24 = vpop.eup %1120 }
  0xfb   : > { %v1328_v25 = vpop.eup %1122  ;;  %v387_v32 = vsel %vm383_vm1, %v1326_v24, 0.0  ;;  %v415_v35 = vmul.f32 %v1326_v24, %v1326_v24 }
  0xfc   : > { %v1330_v26 = vpop.eup %1124  ;;  %v419_v28 = vmul.f32 %v1328_v25, %v1328_v25  ;;  %v400_v36 = vsel %vm383_vm1, %v1328_v25, 0.0 }
  0xfd   : > { %v1332_v27 = vpop.eup %1126  ;;  %v413_v33 = vmul.f32 %v1330_v26, %v1330_v26  ;;  %v384_v37 = vsel %vm383_vm1, %v1330_v26, 0.0  ;;  %v424_v56 = vsel %vm383_vm1, %v415_v35, 0.0 }
  0xfe   : > { %v1336_v29 = vpop.eup %1128  ;;  %v417_v30 = vmul.f32 %v1332_v27, %v1332_v27  ;;  %v397_v38 = vsel %vm383_vm1, %v1332_v27, 0.0  ;;  %v437_v40 = vsel %vm383_vm1, %v419_v28, 0.0 }
  0xff   : > { %v1340_v31 = vpop.eup %1130  ;;  %v421_v48 = vsel %vm383_vm1, %v413_v33, 0.0  ;;  %v416_v49 = vmul.f32 %v1336_v29, %v1336_v29  ;;  %v389_v57 = vsel %vm383_vm1, %v1336_v29, 0.0 }
 0x100   : > { %v1346_v34 = vpop.eup %1132  ;;  %v434_v41 = vsel %vm383_vm1, %v417_v30, 0.0  ;;  %v420_v44 = vmul.f32 %v1340_v31, %v1340_v31  ;;  %v402_v52 = vsel %vm383_vm1, %v1340_v31, 0.0 }
 0x101   : > { %v1356_v39 = vpop.eup %1134  ;;  %v385_v42 = vsel %vm383_vm1, %v1346_v34, 0.0  ;;  %v414_v43 = vmul.f32 %v1346_v34, %v1346_v34  ;;  %v426_v63 = vsel %vm383_vm1, %v416_v49, 0.0 }
 0x102   : > { %v386_v45 = vadd.f32 %v385_v42, %v384_v37  ;;  %v398_v46 = vsel %vm383_vm1, %v1356_v39, 0.0  ;;  %v418_v47 = vmul.f32 %v1356_v39, %v1356_v39  ;;  %v439_v60 = vsel %vm383_vm1, %v420_v44, 0.0 }
 0x103   : > { %v422_v50 = vsel %vm383_vm1, %v414_v43, 0.0  ;;  %v399_v51 = vadd.f32 %v398_v46, %v397_v38  ;;  %v463_v46 = vlaneseq }
 0x104   : > { %v388_v53 = vadd.f32 %v387_v32, %v386_v45  ;;  %v423_v54 = vadd.f32 %v422_v50, %v421_v48  ;;  %v435_v55 = vsel %vm383_vm1, %v418_v47, 0.0  ;;  %v265_v48 = vld [vmem:[%s1552_s2 + $0x1] sm:$0x1] }
 0x105   : > { %v401_v58 = vadd.f32 %v400_v36, %v399_v51  ;;  %v436_v59 = vadd.f32 %v435_v55, %v434_v41  ;;  %v464_v47 = vshrl.u32 %v463_v46, 7 }
 0x106   : > { %v425_v61 = vadd.f32 %v424_v56, %v423_v54  ;;  %v390_v62 = vadd.f32 %v389_v57, %v388_v53  ;;  %v266_v53 = vld [vmem:[%s1552_s2 + $0x2] sm:$0x1] }
 0x107   : > { %v438_v0 = vadd.f32 %v437_v40, %v436_v59  ;;  %v403_v1 = vadd.f32 %v402_v52, %v401_v58  ;;  %v1385_v49 = vsub.s32 0, %v464_v47 }
 0x108   : > { %v427_v2 = vadd.f32 %v426_v63, %v425_v61  ;;  %v391_v3 = vrot.slane %v390_v62, 4 }
 0x109   : > { %v440_v4 = vadd.f32 %v439_v60, %v438_v0  ;;  %v404_v5 = vrot.slane %v403_v1, 4 }
 0x10a   : > { %v428_v6 = vrot.slane %v427_v2, 4  ;;  %v392_v7 = vadd.f32 %v391_v3, %v390_v62 }
 0x10b   : > { %v441_v8 = vrot.slane %v440_v4, 4  ;;  %v405_v9 = vadd.f32 %v404_v5, %v403_v1 }
 0x10c   : > { %v393_v10 = vrot.slane %v392_v7, 2  ;;  %v429_v11 = vadd.f32 %v428_v6, %v427_v2 }
 0x10d   : > { %v406_v12 = vrot.slane %v405_v9, 2  ;;  %v442_v13 = vadd.f32 %v441_v8, %v440_v4 }
 0x10e   : > { %v394_v14 = vadd.f32 %v393_v10, %v392_v7  ;;  %v430_v15 = vrot.slane %v429_v11, 2 }
 0x10f   : > { %v407_v16 = vadd.f32 %v406_v12, %v405_v9  ;;  %v443_v17 = vrot.slane %v442_v13, 2 }
 0x110   : > { %v395_v18 = vrot.slane %v394_v14, 1  ;;  %v431_v19 = vadd.f32 %v430_v15, %v429_v11 }
 0x111   : > { %v408_v20 = vrot.slane %v407_v16, 1  ;;  %v444_v21 = vadd.f32 %v443_v17, %v442_v13  ;;  %v958_v13 = vld [vmem:[%s1552_s2 + $0x4] ss:$0 sm:$0xff] }
 0x112   : > { %v396_v22 = vadd.f32 %v395_v18, %v394_v14  ;;  %v432_v23 = vrot.slane %v431_v19, 1 }
 0x113   : > { %v409_v28 = vadd.f32 %v408_v20, %v407_v16  ;;  %v445_v30 = vrot.slane %v444_v21, 1 }
 0x114   : > { %v411_v32 = vmul.f32 0.03125, %v396_v22  ;;  %v433_v33 = vadd.f32 %v432_v23, %v431_v19 }
 0x115   : > { %v412_v35 = vmul.f32 0.03125, %v409_v28  ;;  %v446_v36 = vadd.f32 %v445_v30, %v444_v21 }
 0x116   : > { %v447_v37 = vmul.f32 0.03125, %v433_v33  ;;  %v449_v38 = vmul.f32 %v411_v32, %v411_v32 }
 0x117   : > { %v448_v40 = vmul.f32 0.03125, %v446_v36  ;;  %v450_v41 = vmul.f32 %v412_v35, %v412_v35 }
 0x118   : > { %v451_v42 = vsub.f32 %v447_v37, %v449_v38 }
 0x119   : > { %v452_v43 = vsub.f32 %v448_v40, %v450_v41 }
 0x11a   : > { %v453_v44 = vadd.f32 1e-05, %v451_v42 }
 0x11b   : > { %v454_v45 = vadd.f32 1e-05, %v452_v43 }
 0x11c   : > { %1136 = vrsqrt.f32 %v453_v44 }
 0x11d   : > { %1138 = vrsqrt.f32 %v454_v45 }
 0x126   : > { %v1137_v50 = vpop.eup %1136 }
 0x127   : > { %v1139_v51 = vpop.eup %1138  ;;  %v457_v52 = vmul.f32 %v1137_v50, %v265_v48 }
 0x128   : > { %v458_v54 = vmul.f32 %v1139_v51, %v265_v48 }
 0x129   : > { %v459_v55 = vmul.f32 %v457_v52, %v411_v32  ;;  %v466_v56 = vrot.slane %v457_v52, %v1385_v49 }
 0x12a   : > { %v460_v57 = vmul.f32 %v458_v54, %v412_v35  ;;  %v470_v58 = vrot.slane %v458_v54, %v1385_v49 }
 0x12b   : > { %v461_v59 = vsub.f32 %v266_v53, %v459_v55  ;;  %v471_v60 = vmul.f32 %v1330_v26, %v466_v56  ;;  %v472_v61 = vmul.f32 %v1346_v34, %v466_v56  ;;  %v473_v62 = vmul.f32 %v1326_v24, %v466_v56 }
 0x12c   : > { %v474_v63 = vmul.f32 %v1336_v29, %v466_v56  ;;  %v462_v0 = vsub.f32 %v266_v53, %v460_v57  ;;  %v475_v1 = vmul.f32 %v1332_v27, %v470_v58  ;;  %v476_v2 = vmul.f32 %v1356_v39, %v470_v58 }
 0x12d   : > { %v482_v3 = vrot.slane %v461_v59, %v1385_v49  ;;  %v477_v4 = vmul.f32 %v1328_v25, %v470_v58  ;;  %v478_v5 = vmul.f32 %v1340_v31, %v470_v58  ;;  %v1118_v25 = vld [vmem:[%s1554_s4] sm:$0xff]   ;;  %v1119_v31 = vld [vmem:[%s1554_s4 + $0x8] sm:$0xff]  }
 0x12e   : > { %v486_v6 = vrot.slane %v462_v0, %v1385_v49  ;;  %1056 = vmatprep.subr.bf16.mxu0 %v1118_v25 }
 0x12f   : > { %v487_v26 = vadd.f32 %v482_v3, %v471_v60  ;;  %v488_v7 = vadd.f32 %v482_v3, %v472_v61  ;;  %v489_v34 = vadd.f32 %v482_v3, %v473_v62  ;;  %v490_v8 = vadd.f32 %v482_v3, %v474_v63  ;;  %1057 = vmatpush3.bf16.msra.mxu0 %v1118_v25 }
 0x130   : > { %v491_v24 = vadd.f32 %v486_v6, %v475_v1  ;;  %v492_v9 = vadd.f32 %v486_v6, %v476_v2  ;;  %v493_v29 = vadd.f32 %v486_v6, %v477_v4  ;;  %v494_v10 = vadd.f32 %v486_v6, %v478_v5  ;;  %1058 = vmatprep.subr.bf16.mxu0 %v1119_v31 }
 0x131   : > { %v495_v11 = vpack.c.bf16 %v488_v7, %v487_v26  ;;  %v496_v27 = vpack.c.bf16 %v490_v8, %v489_v34 }
 0x132   : > { %v497_v12 = vpack.c.bf16 %v492_v9, %v491_v24  ;;  %v498_v39 = vpack.c.bf16 %v494_v10, %v493_v29 }
 0x133   : > { %1048 = vmatprep.mubr.msk.bf16.mxu1 %vm383_vm1, %v495_v11  ;;  %1059 = vmatpush3.bf16.msra.mxu0 %v1119_v31 }
 0x134   : > { %1049 = vmatmul.mubr.msk.bf16.vlgmr.msra.gmra.mrb[4].mxu1 %vm383_vm1, %v496_v27 }
 0x135   : > { %1052 = vmatprep.mubr.msk.bf16.mxu1 %vm383_vm1, %v497_v12 }
 0x13c   : > { %1053 = vmatmul.mubr.msk.bf16.gmra.mrb[8].mxu1 %vm383_vm1, %v498_v39 }
 0x207   : > { %v1050_v14 = vpop.f32.mrb[4].mxu1 }
 0x208   : > { %v578_v15 = vadd.f32 %v1050_v14, %v958_v13  ;;  %v569_v16 = vpop.f32.mrb[5].mxu1 }
 0x209   : > { %v570_v17 = vadd.f32 %v958_v13, %v569_v16  ;;  %v1051_v18 = vpop.f32.mrb[6].mxu1 }
 0x20a   : > { %1140 = vtanh.f32 %v578_v15  ;;  %v581_v19 = vadd.f32 %v1051_v18, %v958_v13  ;;  %v572_v20 = vpop.f32.mrb[7].mxu1 }
 0x20b   : > { %1142 = vtanh.f32 %v570_v17  ;;  %v573_v21 = vadd.f32 %v958_v13, %v572_v20 }
 0x20c   : > { %1144 = vtanh.f32 %v581_v19 }
 0x20d   : > { %1146 = vtanh.f32 %v573_v21 }
 0x20f   : > { %v1054_v22 = vpop.f32.mrb[8].mxu1 }
 0x210   : > { %v594_v23 = vadd.f32 %v1054_v22, %v958_v13  ;;  %v585_v28 = vpop.f32.mrb[9].mxu1 }
 0x211   : > { %v586_v30 = vadd.f32 %v958_v13, %v585_v28  ;;  %v1055_v32 = vpop.f32.mrb[10].mxu1 }
 0x212   : > { %1148 = vtanh.f32 %v594_v23  ;;  %v597_v33 = vadd.f32 %v1055_v32, %v958_v13  ;;  %v588_v35 = vpop.f32.mrb[11].mxu1 }
 0x213   : > { %1150 = vtanh.f32 %v586_v30  ;;  %v589_v36 = vadd.f32 %v958_v13, %v588_v35 }
 0x214   : > { %v1415_v37 = vpop.eup %1140  ;;  %1152 = vtanh.f32 %v597_v33 }
 0x215   : > { %v1417_v38 = vpop.eup %1142  ;;  %1154 = vtanh.f32 %v589_v36  ;;  %v638_v43 = vmul.f32 %v1415_v37, %v1415_v37  ;;  %v611_v48 = vsel %vm383_vm1, %v1415_v37, 0.0 }
 0x216   : > { %v1419_v40 = vpop.eup %1144  ;;  %v636_v41 = vmul.f32 %v1417_v38, %v1417_v38  ;;  %v608_v44 = vsel %vm383_vm1, %v1417_v38, 0.0 }
 0x217   : > { %v1423_v42 = vpop.eup %1146  ;;  %v639_v51 = vmul.f32 %v1419_v40, %v1419_v40  ;;  %v647_v56 = vsel %vm383_vm1, %v638_v43, 0.0  ;;  %v613_v57 = vsel %vm383_vm1, %v1419_v40, 0.0 }
 0x218   : > { %v609_v45 = vsel %vm383_vm1, %v1423_v42, 0.0  ;;  %v637_v46 = vmul.f32 %v1423_v42, %v1423_v42  ;;  %v644_v50 = vsel %vm383_vm1, %v636_v41, 0.0 }
 0x219   : > { %v610_v47 = vadd.f32 %v609_v45, %v608_v44  ;;  %v649_v62 = vsel %vm383_vm1, %v639_v51, 0.0 }
 0x21a   : > { %v645_v52 = vsel %vm383_vm1, %v637_v46, 0.0 }
 0x21b   : > { %v612_v53 = vadd.f32 %v611_v48, %v610_v47  ;;  %v646_v54 = vadd.f32 %v645_v52, %v644_v50 }
 0x21c   : > { %v1439_v55 = vpop.eup %1148 }
 0x21d   : > { %v1444_v58 = vpop.eup %1150  ;;  %v648_v59 = vadd.f32 %v647_v56, %v646_v54  ;;  %v614_v60 = vadd.f32 %v613_v57, %v612_v53  ;;  %v642_v2 = vmul.f32 %v1439_v55, %v1439_v55  ;;  %v624_v7 = vsel %vm383_vm1, %v1439_v55, 0.0 }
 0x21e   : > { %v1446_v61 = vpop.eup %1152  ;;  %v640_v63 = vmul.f32 %v1444_v58, %v1444_v58  ;;  %v621_v3 = vsel %vm383_vm1, %v1444_v58, 0.0 }
 0x21f   : > { %v1451_v0 = vpop.eup %1154  ;;  %v650_v1 = vadd.f32 %v649_v62, %v648_v59  ;;  %v615_v6 = vrot.slane %v614_v60, 4  ;;  %v643_v24 = vmul.f32 %v1446_v61, %v1446_v61  ;;  %v660_v12 = vsel %vm383_vm1, %v642_v2, 0.0 }
 0x220   : > { %v622_v4 = vsel %vm383_vm1, %v1451_v0, 0.0  ;;  %v641_v5 = vmul.f32 %v1451_v0, %v1451_v0  ;;  %v657_v8 = vsel %vm383_vm1, %v640_v63, 0.0  ;;  %v626_v39 = vsel %vm383_vm1, %v1446_v61, 0.0 }
 0x221   : > { %v651_v26 = vrot.slane %v650_v1, 4  ;;  %v623_v34 = vadd.f32 %v622_v4, %v621_v3  ;;  %v616_v29 = vadd.f32 %v615_v6, %v614_v60  ;;  %v662_v15 = vsel %vm383_vm1, %v643_v24, 0.0  ;;  %v956_v60 = vld [vmem:[%s1552_s2 + $0x5] sm:$0x1] }
 0x222   : > { %v658_v9 = vsel %vm383_vm1, %v641_v5, 0.0 }
 0x223   : > { %v625_v10 = vadd.f32 %v624_v7, %v623_v34  ;;  %v659_v11 = vadd.f32 %v658_v9, %v657_v8  ;;  %v652_v27 = vadd.f32 %v651_v26, %v650_v1  ;;  %v617_v25 = vrot.slane %v616_v29, 2  ;;  %v957_v1 = vld [vmem:[%s1552_s2 + $0x6] sm:$0x1] }
 0x225   : > { %v661_v31 = vadd.f32 %v660_v12, %v659_v11  ;;  %v653_v13 = vrot.slane %v652_v27, 2  ;;  %v627_v14 = vadd.f32 %v626_v39, %v625_v10  ;;  %v618_v16 = vadd.f32 %v617_v25, %v616_v29 }
 0x227   : > { %v663_v17 = vadd.f32 %v662_v15, %v661_v31  ;;  %v654_v18 = vadd.f32 %v653_v13, %v652_v27  ;;  %v628_v19 = vrot.slane %v627_v14, 4  ;;  %v619_v20 = vrot.slane %v618_v16, 1 }
 0x229   : > { %v664_v21 = vrot.slane %v663_v17, 4  ;;  %v655_v22 = vrot.slane %v654_v18, 1  ;;  %v629_v23 = vadd.f32 %v628_v19, %v627_v14  ;;  %v620_v28 = vadd.f32 %v619_v20, %v618_v16 }
 0x22b   : > { %v656_v30 = vadd.f32 %v655_v22, %v654_v18  ;;  %v630_v32 = vrot.slane %v629_v23, 2  ;;  %v665_v33 = vadd.f32 %v664_v21, %v663_v17  ;;  %v634_v35 = vmul.f32 0.03125, %v620_v28 }
 0x22d   : > { %v670_v36 = vmul.f32 0.03125, %v656_v30  ;;  %v631_v41 = vadd.f32 %v630_v32, %v629_v23  ;;  %v666_v43 = vrot.slane %v665_v33, 2  ;;  %v672_v44 = vmul.f32 %v634_v35, %v634_v35 }
 0x22f   : > { %v632_v45 = vrot.slane %v631_v41, 1  ;;  %v667_v46 = vadd.f32 %v666_v43, %v665_v33  ;;  %v674_v47 = vsub.f32 %v670_v36, %v672_v44 }
 0x231   : > { %v633_v48 = vadd.f32 %v632_v45, %v631_v41  ;;  %v668_v50 = vrot.slane %v667_v46, 1  ;;  %v676_v51 = vadd.f32 1e-05, %v674_v47 }
 0x233   : > { %v635_v52 = vmul.f32 0.03125, %v633_v48  ;;  %v669_v53 = vadd.f32 %v668_v50, %v667_v46  ;;  %1156 = vrsqrt.f32 %v676_v51 }
 0x235   : > { %v671_v54 = vmul.f32 0.03125, %v669_v53  ;;  %v673_v56 = vmul.f32 %v635_v52, %v635_v52 }
 0x237   : > { %v675_v57 = vsub.f32 %v671_v54, %v673_v56 }
 0x239   : > { %v677_v59 = vadd.f32 1e-05, %v675_v57 }
 0x23b   : > { %1158 = vrsqrt.f32 %v677_v59 }
 0x23d   : > { %v1157_v62 = vpop.eup %1156 }
 0x23e   : > { %v680_v63 = vmul.f32 %v1157_v62, %v956_v60 }
 0x240   : > { %v682_v2 = vmul.f32 %v680_v63, %v634_v35  ;;  %v689_v3 = vrot.slane %v680_v63, %v1385_v49 }
 0x242   : > { %v684_v4 = vsub.f32 %v957_v1, %v682_v2  ;;  %v694_v5 = vmul.f32 %v1417_v38, %v689_v3  ;;  %v695_v6 = vmul.f32 %v1423_v42, %v689_v3  ;;  %v696_v26 = vmul.f32 %v1415_v37, %v689_v3 }
 0x243   : > { %v697_v7 = vmul.f32 %v1419_v40, %v689_v3 }
 0x244   : > { %v705_v8 = vrot.slane %v684_v4, %v1385_v49 }
 0x245   : > { %v1159_v34 = vpop.eup %1158 }
 0x246   : > { %v681_v24 = vmul.f32 %v1159_v34, %v956_v60  ;;  %v710_v9 = vadd.f32 %v705_v8, %v694_v5  ;;  %v711_v29 = vadd.f32 %v705_v8, %v695_v6  ;;  %v712_v10 = vadd.f32 %v705_v8, %v696_v26 }
 0x247   : > { %v713_v11 = vadd.f32 %v705_v8, %v697_v7 }
 0x248   : > { %v683_v27 = vmul.f32 %v681_v24, %v635_v52  ;;  %v693_v12 = vrot.slane %v681_v24, %v1385_v49  ;;  %v718_v39 = vpack.c.bf16 %v711_v29, %v710_v9 }
 0x249   : > { %v719_v25 = vpack.c.bf16 %v713_v11, %v712_v10 }
 0x24a   : > { %v685_v38 = vsub.f32 %v957_v1, %v683_v27  ;;  %v698_v42 = vmul.f32 %v1444_v58, %v693_v12  ;;  %v699_v37 = vmul.f32 %v1451_v0, %v693_v12  ;;  %v700_v40 = vmul.f32 %v1439_v55, %v693_v12  ;;  %1060 = vmatprep.mubr.msk.bf16.mxu0 %vm383_vm1, %v718_v39  ;;  %v965_v58 = vld [vmem:[%s1555_s5] ss:$0 sm:$0xff] }
 0x24b   : > { %v701_v31 = vmul.f32 %v1446_v61, %v693_v12  ;;  %1061 = vmatmul.mubr.msk.bf16.vlgmr.msra.gmra.mrb[4].mxu0 %vm383_vm1, %v719_v25 }
 0x24c   : > { %v709_v13 = vrot.slane %v685_v38, %v1385_v49 }
 0x24e   : > { %v714_v14 = vadd.f32 %v709_v13, %v698_v42  ;;  %v715_v15 = vadd.f32 %v709_v13, %v699_v37  ;;  %v716_v16 = vadd.f32 %v709_v13, %v700_v40  ;;  %v717_v17 = vadd.f32 %v709_v13, %v701_v31 }
 0x250   : > { %v720_v18 = vpack.c.bf16 %v715_v15, %v714_v14  ;;  %v721_v19 = vpack.c.bf16 %v717_v17, %v716_v16 }
 0x252   : > { %1064 = vmatprep.mubr.msk.bf16.mxu0 %vm383_vm1, %v720_v18 }
 0x253   : > { %1065 = vmatmul.mubr.msk.bf16.gmra.mrb[8].mxu0 %vm383_vm1, %v721_v19 }
 0x31e   : > { %v1062_v55 = vpop.f32.mrb[4].mxu0 }
 0x31f   : > { %v791_v61 = vpop.f32.mrb[5].mxu0  ;;  %v800_v0 = vadd.f32 %v1062_v55, %v965_v58 }
 0x320   : > { %v1063_v49 = vpop.f32.mrb[6].mxu0  ;;  %v792_v22 = vadd.f32 %v965_v58, %v791_v61 }
 0x321   : > { %v803_v20 = vadd.f32 %v1063_v49, %v965_v58  ;;  %v794_v21 = vpop.f32.mrb[7].mxu0 }
 0x322   : > { %v795_v23 = vadd.f32 %v965_v58, %v794_v21 }
 0x323   : > { %v1002_v28 = vpack.c.bf16 %v803_v20, %v800_v0 }
 0x324   : > { %v997_v30 = vpack.c.bf16 %v795_v23, %v792_v22 }
 0x325   : > { %1014 = vst [vmem:[%s245_s10 + $0x8] sm:$0xff] %v1002_v28  }
 0x326   : > { %998 = vst [vmem:[%s245_s10] sm:$0xff] %v997_v30   ;;  %v1066_v32 = vpop.f32.mrb[8].mxu0 }
 0x327   : > { %v807_v33 = vpop.f32.mrb[9].mxu0  ;;  %v816_v36 = vadd.f32 %v1066_v32, %v965_v58 }
 0x328   : > { %v1067_v35 = vpop.f32.mrb[10].mxu0  ;;  %v808_v44 = vadd.f32 %v965_v58, %v807_v33 }
 0x329   : > { %v819_v41 = vadd.f32 %v1067_v35, %v965_v58  ;;  %v810_v43 = vpop.f32.mrb[11].mxu0 }
 0x32a   : > { %v811_v45 = vadd.f32 %v965_v58, %v810_v43 }
 0x32b   : > { %v1012_v46 = vpack.c.bf16 %v819_v41, %v816_v36 }
 0x32c   : > { %v1007_v47 = vpack.c.bf16 %v811_v45, %v808_v44 }
 0x32d   : > { %1016 = vst [vmem:[%s245_s10 + $0x18] sm:$0xff] %v1012_v46  }
 0x32e   : > { %1015 = vst [vmem:[%s245_s10 + $0x10] sm:$0xff] %v1007_v47  }
 0x32f   : > { %1173 = shalt.err (!%p1170_p3)
}
 0x330   : > { %s1174_s20 = scalar_lea.hbm %s1505_s15, 512  ;;  %s1178_s29 = scalar_lea.hbm %s1556_s6, 1024 }
 0x331   : > { %p1175_p4 = scmp.ne.s32.totalorder %s1505_s15, %s1174_s20  ;;  %p1179_p9 = scmp.lt.u32.totalorder %s1505_s15, %s1556_s6 }
 0x332   : > { %p1180_p10 = scmp.lt.u32.totalorder %s1178_s29, %s1174_s20  ;;  %p1182_p12 = scmp.lt.u32.totalorder %s1174_s20, %s1505_s15 }
 0x333   : > { %p1176_p7 = pnand %p1175_p4, %p1300_p5 }
 0x334   : > { %p1181_p11 = por %p1180_p10, %p1179_p9 }
 0x335   : > { %p1177_p8 = pneg %p1176_p7 }
 0x336   : > { %p1183_p13 = por %p1182_p12, %p1181_p11 }
 0x338   : > { %p1184_p0 = pnand %p1183_p13, %p1177_p8 }
 0x33a   : > { %1187 = shalt.err (!%p1184_p0)
}
 0x33b   : > { %s1225_s12 = smov 64   ;;  %s1226_s13 = smov 4  }
 0x33c   : > { %1070 = dma.vmem_to_hbm [thread:$0]  (%p1300_p5), %s1500_s11, 512, %s1505_s15, %s1509_s16, %s1225_s12, %s1225_s12, %s1226_s13  }
 0x33d PF: > { %p1076_p1 = scmp.ge.s32.totalorder %s1222_s24, 2  ;;  %s891_s14 = sand.u32 1, %s1210_s21  }
 0x33e   : > { %s892_s25 = scalar_lea.sflag [#allocation3], %s891_s14 }
 0x33f   : > { %p1073_p2 = pnand %p1076_p1, %p1304_p6 }
 0x341   : > { %1205 = dma.done.wait (!%p1073_p2), %s892_s25, 512  }
 0x342   : > { %1207 = vsyncadd (!%p1073_p2), %s892_s25, 4294966784  ;;  %p16_p3 = scmp.ge.s32.totalorder %s1287_s27, 4   ;;  %s1559_s21 = smov %s1214_s22 }
 0x343   : > { %s1560_s22 = smov %s1218_s23  ;;  %s1561_s23 = smov %s1298_s30 }
 0x344   : > { %s1562_s24 = smov %s1287_s27  ;;  %18 = sbr.rel (!%p16_p3) target bundleno = 3 (0x3), region = 80 }
 0x34b   :  { %897 = vsyncpa [#allocation3], 1 }
 0x34c   :  { %899 = vsyncpa [#allocation3 + $0x1], 1 }

// kernel: tpu_custom_call.1
= control target key start
LH: loop header
LB: loop body
LE: loop exit
PB: predicated region body
PF: predicated region fallthrough
CT: control target
= control target key end

     0   :  { %11 = vsyncpa [#allocation3], 0  ;;  %s1550_s0 = inlined_call_operand.vmem [shape: bf16[128,16], index: 0, kind: input, shape index: {}]   ;;  %s1551_s1 = inlined_call_operand.vmem [shape: bf16[16,32], index: 1, kind: input, shape index: {}]   ;;  %s1552_s2 = inlined_call_operand.vmem [shape: f32[2,3,32], index: 2, kind: input, shape index: {}]   ;;  %s1553_s3 = inlined_call_operand.vmem [shape: bf16[1,32,32], index: 3, kind: input, shape index: {}]   ;;  %s1554_s4 = inlined_call_operand.vmem [shape: bf16[32,128], index: 4, kind: input, shape index: {}]   ;;  %s1555_s5 = inlined_call_operand.vmem [shape: f32[1,128], index: 5, kind: input, shape index: {}]   ;;  %s1556_s6 = inlined_call_operand.hbm [shape: bf16[128,128], index: 6, kind: output, shape index: {}]  }
   0x1   :  { %13 = vsyncpa [#allocation3 + $0x1], 0  ;;  %s1262_s21 = smov 0   ;;  %s1264_s22 = smov 0  }
   0x2   :  { %s1266_s23 = smov 0   ;;  %s1268_s24 = smov 0  }
   0x3 LB: > { %s1283_s25 = sadd.s32 4294967295, %s1222_s24   ;;  %s938_s26 = sadd.s32 4294967294, %s1222_s24   ;;  %s1222_s24 = sphi %s1268_s24, %s1562_s24   ;;  %s1218_s23 = sphi %s1266_s23, %s1561_s23   ;;  %s1214_s22 = sphi %s1264_s22, %s1560_s22   ;;  %s1210_s21 = sphi %s1262_s21, %s1559_s21  }
   0x4   : > { %s1287_s27 = sadd.s32 1, %s1222_s24   ;;  %s157_s28 = sadd.s32 1, %s1218_s23 }
   0x5   : > { %s154_s29 = ssub.s32 %s1222_s24, %s1287_s27  ;;  %p167_p0 = scmp.ne.s32.totalorder %s1218_s23, %s1214_s22 }
   0x6   : > { %p155_p1 = scmp.eq.s32.totalorder %s154_s29, 0  ;;  %p168_p2 = scmp.eq.s32.totalorder %s1283_s25, 1 }
   0x7   : > { %p173_p3 = scmp.ne.s32.totalorder %s1214_s22, %s1210_s21  ;;  %p174_p4 = scmp.eq.s32.totalorder %s938_s26, 1 }
   0x8   : > { %s1298_s30 = scalar_select %p155_p1, %s1218_s23, %s157_s28  }
   0x9   : > { %p1300_p5 = por %p168_p2, %p167_p0  ;;  %p1304_p6 = por %p174_p4, %p173_p3 }
   0xa   : > { %p941_p7 = scmp.ge.s32.totalorder %s1222_s24, 1  ;;  %p216_p8 = scmp.lt.s32.totalorder %s1222_s24, 3 }
   0xc   : > { %p217_p9 = pnand %p941_p7, %p216_p8 }
   0xd   : > { %v1111_v0 = vld [vmem:[%s1551_s1] sm:$0xff] (!%p217_p9)   ;;  %s943_s11 = sshll.u32 (!%p217_p9), %s1283_s25, 3  ;;  %vm297_vm0 = vcmask (!%p217_p9), 130048   ;;  %v1117_v6 = vld [vmem:[%s1553_s3 + $0x8] sm:$0xff] (!%p217_p9)   ;;  %vm383_vm1 = vcmask (!%p217_p9), 261120   ;;  %s243_s26 = sand.u32 (!%p217_p9), 1, %s1214_s22  }
   0xe   : > { %220 = sbr.rel (%p217_p9) target bundleno = 829 (0x33d), region = 44  ;;  %p247_p10 = scmp.lt.s32.totalorder (!%p217_p9), %s943_s11, 15  ;;  %1034 = vmatprep.subr.bf16.mxu0 (!%p217_p9), %v1111_v0  ;;  %1068 = vmatprep.subr.bf16.mxu1 (!%p217_p9), %v1111_v0  ;;  %v1116_v5 = vld [vmem:[%s1553_s3] sm:$0xff] (!%p217_p9)  }
   0xf   : > { %1035 = vmatpush3.bf16.msra.mxu0 (!%p217_p9), %v1111_v0  ;;  %1069 = vmatpush3.bf16.msra.mxu1 (!%p217_p9), %v1111_v0  ;;  %v945_v7 = vld [vmem:[%s1552_s2] ss:$0 sm:$0xff] (!%p217_p9)  ;;  %s942_s9 = sshll.u32 (!%p217_p9), %s243_s26, 5  ;;  %s1509_s16 = scalar_lea.sflag (!%p217_p9), [#allocation3], %s243_s26 }
  0x10   : > { %1044 = vmatprep.subr.bf16.mxu1 (!%p217_p9), %v1116_v5  ;;  %s245_s10 = scalar_lea.vmem (!%p217_p9), [#allocation2], %s942_s9  ;;  %s1224_s17 = smov (!%p217_p9), [#allocation2]  }
  0x11   : > { %s1164_s18 = sshll.u32 (!%p217_p9), %s1224_s17, 4  ;;  %s1165_s18 = int_to_ptr.vmem [resolvable:$false] %s1164_s18 }
  0x12   : > { %s1166_s19 = scalar_lea.vmem (!%p217_p9), %s1165_s18, 1024 }
  0x15   : > { %s1564_s11 = smov (!%p247_p10, %s943_s11), 15 }
  0x16   : > { %s944_s12 = sshll.u32 %s1564_s11, 2  ;;  %s876_s11 = sshll.u32 %s245_s10, 4  ;;  %s1500_s11 = int_to_ptr.vmem [resolvable:$true] %s876_s11 }
  0x17   : > { %s250_s15 = scalar_lea.vmem %s1550_s0, %s944_s12  ;;  %s993_s12 = sshll.u32 %s1283_s25, 9 }
  0x18   : > { %v1112_v1 = vld [vmem:[%s250_s15] sm:$0xff]   ;;  %v1113_v2 = vld [vmem:[%s250_s15 + $0x10] sm:$0xff]   ;;  %v1114_v3 = vld [vmem:[%s250_s15 + $0x8] sm:$0xff]   ;;  %s1160_s25 = scalar_lea.vmem %s1500_s11, 512  ;;  %p1167_p0 = scmp.lt.s32.totalorder %s1500_s11, %s1165_s18 }
  0x19   : > { %1036 = vmatprep.mubr.msk.bf16.mxu0 %vm297_vm0, %v1112_v1  ;;  %1040 = vmatprep.mubr.msk.bf16.mxu1 %vm297_vm0, %v1113_v2  ;;  %v1115_v4 = vld [vmem:[%s250_s15 + $0x18] sm:$0xff]   ;;  %s1505_s15 = scalar_lea.hbm %s1556_s6, %s993_s12  ;;  %p1161_p11 = scmp.ne.s32.totalorder %s1500_s11, %s1160_s25 }
  0x1a   : > { %1037 = vmatmul.mubr.msk.bf16.vlgmr.msra.gmra.mrb[0].mxu0 %vm297_vm0, %v1114_v3  ;;  %1041 = vmatmul.mubr.msk.bf16.vlgmr.msra.gmra.mrb[0].mxu1 %vm297_vm0, %v1115_v4  ;;  %p1168_p1 = scmp.lt.s32.totalorder %s1166_s19, %s1160_s25 }
  0x1b   : > { %1045 = vmatpush3.bf16.msra.mxu1 %v1116_v5  ;;  %p1162_p12 = pnand %p1161_p11, %p1300_p5 }
  0x1c   : > { %1046 = vmatprep.subr.bf16.mxu1 %v1117_v6  ;;  %p1169_p2 = por %p1168_p1, %p1167_p0 }
  0x1d   : > { %p1163_p13 = pneg %p1162_p12 }
  0x1f   : > { %1047 = vmatpush3.bf16.msra.mxu1 %v1117_v6  ;;  %p1170_p3 = pnand %p1169_p2, %p1163_p13 }
  0xed   : > { %v1038_v8 = vpop.f32.mrb[0].mxu0  ;;  %v1042_v10 = vpop.f32.mrb[0].mxu1 }
  0xee   : > { %v353_v9 = vadd.f32 %v1038_v8, %v945_v7  ;;  %v344_v11 = vpop.f32.mrb[1].mxu0  ;;  %v369_v12 = vadd.f32 %v1042_v10, %v945_v7  ;;  %v360_v14 = vpop.f32.mrb[1].mxu1 }
  0xef   : > { %v345_v13 = vadd.f32 %v945_v7, %v344_v11  ;;  %v1039_v15 = vpop.f32.mrb[2].mxu0  ;;  %v361_v16 = vadd.f32 %v945_v7, %v360_v14  ;;  %v1043_v18 = vpop.f32.mrb[2].mxu1 }
  0xf0   : > { %1120 = vtanh.f32 %v353_v9  ;;  %v356_v17 = vadd.f32 %v1039_v15, %v945_v7  ;;  %v347_v19 = vpop.f32.mrb[3].mxu0  ;;  %v372_v20 = vadd.f32 %v1043_v18, %v945_v7  ;;  %v363_v21 = vpop.f32.mrb[3].mxu1 }
  0xf1   : > { %1122 = vtanh.f32 %v369_v12  ;;  %v348_v22 = vadd.f32 %v945_v7, %v347_v19  ;;  %v364_v23 = vadd.f32 %v945_v7, %v363_v21 }
  0xf2   : > { %1124 = vtanh.f32 %v345_v13 }
  0xf3   : > { %1126 = vtanh.f32 %v361_v16 }
  0xf4   : > { %1128 = vtanh.f32 %v356_v17 }
  0xf5   : > { %1130 = vtanh.f32 %v372_v20 }
  0xf6   : > { %1132 = vtanh.f32 %v348_v22 }
  0xf7   : > { %1134 = vtanh.f32 %v364_v23 }
  0xfa   : > { %v1326_v24 = vpop.eup %1120 }
  0xfb   : > { %v1328_v25 = vpop.eup %1122  ;;  %v387_v32 = vsel %vm383_vm1, %v1326_v24, 0.0  ;;  %v415_v35 = vmul.f32 %v1326_v24, %v1326_v24 }
  0xfc   : > { %v1330_v26 = vpop.eup %1124  ;;  %v419_v28 = vmul.f32 %v1328_v25, %v1328_v25  ;;  %v400_v36 = vsel %vm383_vm1, %v1328_v25, 0.0 }
  0xfd   : > { %v1332_v27 = vpop.eup %1126  ;;  %v413_v33 = vmul.f32 %v1330_v26, %v1330_v26  ;;  %v384_v37 = vsel %vm383_vm1, %v1330_v26, 0.0  ;;  %v424_v56 = vsel %vm383_vm1, %v415_v35, 0.0 }
  0xfe   : > { %v1336_v29 = vpop.eup %1128  ;;  %v417_v30 = vmul.f32 %v1332_v27, %v1332_v27  ;;  %v397_v38 = vsel %vm383_vm1, %v1332_v27, 0.0  ;;  %v437_v40 = vsel %vm383_vm1, %v419_v28, 0.0 }
  0xff   : > { %v1340_v31 = vpop.eup %1130  ;;  %v421_v48 = vsel %vm383_vm1, %v413_v33, 0.0  ;;  %v416_v49 = vmul.f32 %v1336_v29, %v1336_v29  ;;  %v389_v57 = vsel %vm383_vm1, %v1336_v29, 0.0 }
 0x100   : > { %v1346_v34 = vpop.eup %1132  ;;  %v434_v41 = vsel %vm383_vm1, %v417_v30, 0.0  ;;  %v420_v44 = vmul.f32 %v1340_v31, %v1340_v31  ;;  %v402_v52 = vsel %vm383_vm1, %v1340_v31, 0.0 }
 0x101   : > { %v1356_v39 = vpop.eup %1134  ;;  %v385_v42 = vsel %vm383_vm1, %v1346_v34, 0.0  ;;  %v414_v43 = vmul.f32 %v1346_v34, %v1346_v34  ;;  %v426_v63 = vsel %vm383_vm1, %v416_v49, 0.0 }
 0x102   : > { %v386_v45 = vadd.f32 %v385_v42, %v384_v37  ;;  %v398_v46 = vsel %vm383_vm1, %v1356_v39, 0.0  ;;  %v418_v47 = vmul.f32 %v1356_v39, %v1356_v39  ;;  %v439_v60 = vsel %vm383_vm1, %v420_v44, 0.0 }
 0x103   : > { %v422_v50 = vsel %vm383_vm1, %v414_v43, 0.0  ;;  %v399_v51 = vadd.f32 %v398_v46, %v397_v38  ;;  %v463_v46 = vlaneseq }
 0x104   : > { %v388_v53 = vadd.f32 %v387_v32, %v386_v45  ;;  %v423_v54 = vadd.f32 %v422_v50, %v421_v48  ;;  %v435_v55 = vsel %vm383_vm1, %v418_v47, 0.0  ;;  %v265_v48 = vld [vmem:[%s1552_s2 + $0x1] sm:$0x1] }
 0x105   : > { %v401_v58 = vadd.f32 %v400_v36, %v399_v51  ;;  %v436_v59 = vadd.f32 %v435_v55, %v434_v41  ;;  %v464_v47 = vshrl.u32 %v463_v46, 7 }
 0x106   : > { %v425_v61 = vadd.f32 %v424_v56, %v423_v54  ;;  %v390_v62 = vadd.f32 %v389_v57, %v388_v53  ;;  %v266_v53 = vld [vmem:[%s1552_s2 + $0x2] sm:$0x1] }
 0x107   : > { %v438_v0 = vadd.f32 %v437_v40, %v436_v59  ;;  %v403_v1 = vadd.f32 %v402_v52, %v401_v58  ;;  %v1385_v49 = vsub.s32 0, %v464_v47 }
 0x108   : > { %v427_v2 = vadd.f32 %v426_v63, %v425_v61  ;;  %v391_v3 = vrot.slane %v390_v62, 4 }
 0x109   : > { %v440_v4 = vadd.f32 %v439_v60, %v438_v0  ;;  %v404_v5 = vrot.slane %v403_v1, 4 }
 0x10a   : > { %v428_v6 = vrot.slane %v427_v2, 4  ;;  %v392_v7 = vadd.f32 %v391_v3, %v390_v62 }
 0x10b   : > { %v441_v8 = vrot.slane %v440_v4, 4  ;;  %v405_v9 = vadd.f32 %v404_v5, %v403_v1 }
 0x10c   : > { %v393_v10 = vrot.slane %v392_v7, 2  ;;  %v429_v11 = vadd.f32 %v428_v6, %v427_v2 }
 0x10d   : > { %v406_v12 = vrot.slane %v405_v9, 2  ;;  %v442_v13 = vadd.f32 %v441_v8, %v440_v4 }
 0x10e   : > { %v394_v14 = vadd.f32 %v393_v10, %v392_v7  ;;  %v430_v15 = vrot.slane %v429_v11, 2 }
 0x10f   : > { %v407_v16 = vadd.f32 %v406_v12, %v405_v9  ;;  %v443_v17 = vrot.slane %v442_v13, 2 }
 0x110   : > { %v395_v18 = vrot.slane %v394_v14, 1  ;;  %v431_v19 = vadd.f32 %v430_v15, %v429_v11 }
 0x111   : > { %v408_v20 = vrot.slane %v407_v16, 1  ;;  %v444_v21 = vadd.f32 %v443_v17, %v442_v13  ;;  %v958_v13 = vld [vmem:[%s1552_s2 + $0x4] ss:$0 sm:$0xff] }
 0x112   : > { %v396_v22 = vadd.f32 %v395_v18, %v394_v14  ;;  %v432_v23 = vrot.slane %v431_v19, 1 }
 0x113   : > { %v409_v28 = vadd.f32 %v408_v20, %v407_v16  ;;  %v445_v30 = vrot.slane %v444_v21, 1 }
 0x114   : > { %v411_v32 = vmul.f32 0.03125, %v396_v22  ;;  %v433_v33 = vadd.f32 %v432_v23, %v431_v19 }
 0x115   : > { %v412_v35 = vmul.f32 0.03125, %v409_v28  ;;  %v446_v36 = vadd.f32 %v445_v30, %v444_v21 }
 0x116   : > { %v447_v37 = vmul.f32 0.03125, %v433_v33  ;;  %v449_v38 = vmul.f32 %v411_v32, %v411_v32 }
 0x117   : > { %v448_v40 = vmul.f32 0.03125, %v446_v36  ;;  %v450_v41 = vmul.f32 %v412_v35, %v412_v35 }
 0x118   : > { %v451_v42 = vsub.f32 %v447_v37, %v449_v38 }
 0x119   : > { %v452_v43 = vsub.f32 %v448_v40, %v450_v41 }
 0x11a   : > { %v453_v44 = vadd.f32 1e-05, %v451_v42 }
 0x11b   : > { %v454_v45 = vadd.f32 1e-05, %v452_v43 }
 0x11c   : > { %1136 = vrsqrt.f32 %v453_v44 }
 0x11d   : > { %1138 = vrsqrt.f32 %v454_v45 }
 0x126   : > { %v1137_v50 = vpop.eup %1136 }
 0x127   : > { %v1139_v51 = vpop.eup %1138  ;;  %v457_v52 = vmul.f32 %v1137_v50, %v265_v48 }
 0x128   : > { %v458_v54 = vmul.f32 %v1139_v51, %v265_v48 }
 0x129   : > { %v459_v55 = vmul.f32 %v457_v52, %v411_v32  ;;  %v466_v56 = vrot.slane %v457_v52, %v1385_v49 }
 0x12a   : > { %v460_v57 = vmul.f32 %v458_v54, %v412_v35  ;;  %v470_v58 = vrot.slane %v458_v54, %v1385_v49 }
 0x12b   : > { %v461_v59 = vsub.f32 %v266_v53, %v459_v55  ;;  %v471_v60 = vmul.f32 %v1330_v26, %v466_v56  ;;  %v472_v61 = vmul.f32 %v1346_v34, %v466_v56  ;;  %v473_v62 = vmul.f32 %v1326_v24, %v466_v56 }
 0x12c   : > { %v474_v63 = vmul.f32 %v1336_v29, %v466_v56  ;;  %v462_v0 = vsub.f32 %v266_v53, %v460_v57  ;;  %v475_v1 = vmul.f32 %v1332_v27, %v470_v58  ;;  %v476_v2 = vmul.f32 %v1356_v39, %v470_v58 }
 0x12d   : > { %v482_v3 = vrot.slane %v461_v59, %v1385_v49  ;;  %v477_v4 = vmul.f32 %v1328_v25, %v470_v58  ;;  %v478_v5 = vmul.f32 %v1340_v31, %v470_v58  ;;  %v1118_v25 = vld [vmem:[%s1554_s4] sm:$0xff]   ;;  %v1119_v31 = vld [vmem:[%s1554_s4 + $0x8] sm:$0xff]  }
 0x12e   : > { %v486_v6 = vrot.slane %v462_v0, %v1385_v49  ;;  %1056 = vmatprep.subr.bf16.mxu0 %v1118_v25 }
 0x12f   : > { %v487_v26 = vadd.f32 %v482_v3, %v471_v60  ;;  %v488_v7 = vadd.f32 %v482_v3, %v472_v61  ;;  %v489_v34 = vadd.f32 %v482_v3, %v473_v62  ;;  %v490_v8 = vadd.f32 %v482_v3, %v474_v63  ;;  %1057 = vmatpush3.bf16.msra.mxu0 %v1118_v25 }
 0x130   : > { %v491_v24 = vadd.f32 %v486_v6, %v475_v1  ;;  %v492_v9 = vadd.f32 %v486_v6, %v476_v2  ;;  %v493_v29 = vadd.f32 %v486_v6, %v477_v4  ;;  %v494_v10 = vadd.f32 %v486_v6, %v478_v5  ;;  %1058 = vmatprep.subr.bf16.mxu0 %v1119_v31 }
 0x131   : > { %v495_v11 = vpack.c.bf16 %v488_v7, %v487_v26  ;;  %v496_v27 = vpack.c.bf16 %v490_v8, %v489_v34 }
 0x132   : > { %v497_v12 = vpack.c.bf16 %v492_v9, %v491_v24  ;;  %v498_v39 = vpack.c.bf16 %v494_v10, %v493_v29 }
 0x133   : > { %1048 = vmatprep.mubr.msk.bf16.mxu1 %vm383_vm1, %v495_v11  ;;  %1059 = vmatpush3.bf16.msra.mxu0 %v1119_v31 }
 0x134   : > { %1049 = vmatmul.mubr.msk.bf16.vlgmr.msra.gmra.mrb[4].mxu1 %vm383_vm1, %v496_v27 }
 0x135   : > { %1052 = vmatprep.mubr.msk.bf16.mxu1 %vm383_vm1, %v497_v12 }
 0x13c   : > { %1053 = vmatmul.mubr.msk.bf16.gmra.mrb[8].mxu1 %vm383_vm1, %v498_v39 }
 0x207   : > { %v1050_v14 = vpop.f32.mrb[4].mxu1 }
 0x208   : > { %v578_v15 = vadd.f32 %v1050_v14, %v958_v13  ;;  %v569_v16 = vpop.f32.mrb[5].mxu1 }
 0x209   : > { %v570_v17 = vadd.f32 %v958_v13, %v569_v16  ;;  %v1051_v18 = vpop.f32.mrb[6].mxu1 }
 0x20a   : > { %1140 = vtanh.f32 %v578_v15  ;;  %v581_v19 = vadd.f32 %v1051_v18, %v958_v13  ;;  %v572_v20 = vpop.f32.mrb[7].mxu1 }
 0x20b   : > { %1142 = vtanh.f32 %v570_v17  ;;  %v573_v21 = vadd.f32 %v958_v13, %v572_v20 }
 0x20c   : > { %1144 = vtanh.f32 %v581_v19 }
 0x20d   : > { %1146 = vtanh.f32 %v573_v21 }
 0x20f   : > { %v1054_v22 = vpop.f32.mrb[8].mxu1 }
 0x210   : > { %v594_v23 = vadd.f32 %v1054_v22, %v958_v13  ;;  %v585_v28 = vpop.f32.mrb[9].mxu1 }
 0x211   : > { %v586_v30 = vadd.f32 %v958_v13, %v585_v28  ;;  %v1055_v32 = vpop.f32.mrb[10].mxu1 }
 0x212   : > { %1148 = vtanh.f32 %v594_v23  ;;  %v597_v33 = vadd.f32 %v1055_v32, %v958_v13  ;;  %v588_v35 = vpop.f32.mrb[11].mxu1 }
 0x213   : > { %1150 = vtanh.f32 %v586_v30  ;;  %v589_v36 = vadd.f32 %v958_v13, %v588_v35 }
 0x214   : > { %v1415_v37 = vpop.eup %1140  ;;  %1152 = vtanh.f32 %v597_v33 }
 0x215   : > { %v1417_v38 = vpop.eup %1142  ;;  %1154 = vtanh.f32 %v589_v36  ;;  %v638_v43 = vmul.f32 %v1415_v37, %v1415_v37  ;;  %v611_v48 = vsel %vm383_vm1, %v1415_v37, 0.0 }
 0x216   : > { %v1419_v40 = vpop.eup %1144  ;;  %v636_v41 = vmul.f32 %v1417_v38, %v1417_v38  ;;  %v608_v44 = vsel %vm383_vm1, %v1417_v38, 0.0 }
 0x217   : > { %v1423_v42 = vpop.eup %1146  ;;  %v639_v51 = vmul.f32 %v1419_v40, %v1419_v40  ;;  %v647_v56 = vsel %vm383_vm1, %v638_v43, 0.0  ;;  %v613_v57 = vsel %vm383_vm1, %v1419_v40, 0.0 }
 0x218   : > { %v609_v45 = vsel %vm383_vm1, %v1423_v42, 0.0  ;;  %v637_v46 = vmul.f32 %v1423_v42, %v1423_v42  ;;  %v644_v50 = vsel %vm383_vm1, %v636_v41, 0.0 }
 0x219   : > { %v610_v47 = vadd.f32 %v609_v45, %v608_v44  ;;  %v649_v62 = vsel %vm383_vm1, %v639_v51, 0.0 }
 0x21a   : > { %v645_v52 = vsel %vm383_vm1, %v637_v46, 0.0 }
 0x21b   : > { %v612_v53 = vadd.f32 %v611_v48, %v610_v47  ;;  %v646_v54 = vadd.f32 %v645_v52, %v644_v50 }
 0x21c   : > { %v1439_v55 = vpop.eup %1148 }
 0x21d   : > { %v1444_v58 = vpop.eup %1150  ;;  %v648_v59 = vadd.f32 %v647_v56, %v646_v54  ;;  %v614_v60 = vadd.f32 %v613_v57, %v612_v53  ;;  %v642_v2 = vmul.f32 %v1439_v55, %v1439_v55  ;;  %v624_v7 = vsel %vm383_vm1, %v1439_v55, 0.0 }
 0x21e   : > { %v1446_v61 = vpop.eup %1152  ;;  %v640_v63 = vmul.f32 %v1444_v58, %v1444_v58  ;;  %v621_v3 = vsel %vm383_vm1, %v1444_v58, 0.0 }
 0x21f   : > { %v1451_v0 = vpop.eup %1154  ;;  %v650_v1 = vadd.f32 %v649_v62, %v648_v59  ;;  %v615_v6 = vrot.slane %v614_v60, 4  ;;  %v643_v24 = vmul.f32 %v1446_v61, %v1446_v61  ;;  %v660_v12 = vsel %vm383_vm1, %v642_v2, 0.0 }
 0x220   : > { %v622_v4 = vsel %vm383_vm1, %v1451_v0, 0.0  ;;  %v641_v5 = vmul.f32 %v1451_v0, %v1451_v0  ;;  %v657_v8 = vsel %vm383_vm1, %v640_v63, 0.0  ;;  %v626_v39 = vsel %vm383_vm1, %v1446_v61, 0.0 }
 0x221   : > { %v651_v26 = vrot.slane %v650_v1, 4  ;;  %v623_v34 = vadd.f32 %v622_v4, %v621_v3  ;;  %v616_v29 = vadd.f32 %v615_v6, %v614_v60  ;;  %v662_v15 = vsel %vm383_vm1, %v643_v24, 0.0  ;;  %v956_v60 = vld [vmem:[%s1552_s2 + $0x5] sm:$0x1] }
 0x222   : > { %v658_v9 = vsel %vm383_vm1, %v641_v5, 0.0 }
 0x223   : > { %v625_v10 = vadd.f32 %v624_v7, %v623_v34  ;;  %v659_v11 = vadd.f32 %v658_v9, %v657_v8  ;;  %v652_v27 = vadd.f32 %v651_v26, %v650_v1  ;;  %v617_v25 = vrot.slane %v616_v29, 2  ;;  %v957_v1 = vld [vmem:[%s1552_s2 + $0x6] sm:$0x1] }
 0x225   : > { %v661_v31 = vadd.f32 %v660_v12, %v659_v11  ;;  %v653_v13 = vrot.slane %v652_v27, 2  ;;  %v627_v14 = vadd.f32 %v626_v39, %v625_v10  ;;  %v618_v16 = vadd.f32 %v617_v25, %v616_v29 }
 0x227   : > { %v663_v17 = vadd.f32 %v662_v15, %v661_v31  ;;  %v654_v18 = vadd.f32 %v653_v13, %v652_v27  ;;  %v628_v19 = vrot.slane %v627_v14, 4  ;;  %v619_v20 = vrot.slane %v618_v16, 1 }
 0x229   : > { %v664_v21 = vrot.slane %v663_v17, 4  ;;  %v655_v22 = vrot.slane %v654_v18, 1  ;;  %v629_v23 = vadd.f32 %v628_v19, %v627_v14  ;;  %v620_v28 = vadd.f32 %v619_v20, %v618_v16 }
 0x22b   : > { %v656_v30 = vadd.f32 %v655_v22, %v654_v18  ;;  %v630_v32 = vrot.slane %v629_v23, 2  ;;  %v665_v33 = vadd.f32 %v664_v21, %v663_v17  ;;  %v634_v35 = vmul.f32 0.03125, %v620_v28 }
 0x22d   : > { %v670_v36 = vmul.f32 0.03125, %v656_v30  ;;  %v631_v41 = vadd.f32 %v630_v32, %v629_v23  ;;  %v666_v43 = vrot.slane %v665_v33, 2  ;;  %v672_v44 = vmul.f32 %v634_v35, %v634_v35 }
 0x22f   : > { %v632_v45 = vrot.slane %v631_v41, 1  ;;  %v667_v46 = vadd.f32 %v666_v43, %v665_v33  ;;  %v674_v47 = vsub.f32 %v670_v36, %v672_v44 }
 0x231   : > { %v633_v48 = vadd.f32 %v632_v45, %v631_v41  ;;  %v668_v50 = vrot.slane %v667_v46, 1  ;;  %v676_v51 = vadd.f32 1e-05, %v674_v47 }
 0x233   : > { %v635_v52 = vmul.f32 0.03125, %v633_v48  ;;  %v669_v53 = vadd.f32 %v668_v50, %v667_v46  ;;  %1156 = vrsqrt.f32 %v676_v51 }
 0x235   : > { %v671_v54 = vmul.f32 0.03125, %v669_v53  ;;  %v673_v56 = vmul.f32 %v635_v52, %v635_v52 }
 0x237   : > { %v675_v57 = vsub.f32 %v671_v54, %v673_v56 }
 0x239   : > { %v677_v59 = vadd.f32 1e-05, %v675_v57 }
 0x23b   : > { %1158 = vrsqrt.f32 %v677_v59 }
 0x23d   : > { %v1157_v62 = vpop.eup %1156 }
 0x23e   : > { %v680_v63 = vmul.f32 %v1157_v62, %v956_v60 }
 0x240   : > { %v682_v2 = vmul.f32 %v680_v63, %v634_v35  ;;  %v689_v3 = vrot.slane %v680_v63, %v1385_v49 }
 0x242   : > { %v684_v4 = vsub.f32 %v957_v1, %v682_v2  ;;  %v694_v5 = vmul.f32 %v1417_v38, %v689_v3  ;;  %v695_v6 = vmul.f32 %v1423_v42, %v689_v3  ;;  %v696_v26 = vmul.f32 %v1415_v37, %v689_v3 }
 0x243   : > { %v697_v7 = vmul.f32 %v1419_v40, %v689_v3 }
 0x244   : > { %v705_v8 = vrot.slane %v684_v4, %v1385_v49 }
 0x245   : > { %v1159_v34 = vpop.eup %1158 }
 0x246   : > { %v681_v24 = vmul.f32 %v1159_v34, %v956_v60  ;;  %v710_v9 = vadd.f32 %v705_v8, %v694_v5  ;;  %v711_v29 = vadd.f32 %v705_v8, %v695_v6  ;;  %v712_v10 = vadd.f32 %v705_v8, %v696_v26 }
 0x247   : > { %v713_v11 = vadd.f32 %v705_v8, %v697_v7 }
 0x248   : > { %v683_v27 = vmul.f32 %v681_v24, %v635_v52  ;;  %v693_v12 = vrot.slane %v681_v24, %v1385_v49  ;;  %v718_v39 = vpack.c.bf16 %v711_v29, %v710_v9 }
 0x249   : > { %v719_v25 = vpack.c.bf16 %v713_v11, %v712_v10 }
 0x24a   : > { %v685_v38 = vsub.f32 %v957_v1, %v683_v27  ;;  %v698_v42 = vmul.f32 %v1444_v58, %v693_v12  ;;  %v699_v37 = vmul.f32 %v1451_v0, %v693_v12  ;;  %v700_v40 = vmul.f32 %v1439_v55, %v693_v12  ;;  %1060 = vmatprep.mubr.msk.bf16.mxu0 %vm383_vm1, %v718_v39  ;;  %v965_v58 = vld [vmem:[%s1555_s5] ss:$0 sm:$0xff] }
 0x24b   : > { %v701_v31 = vmul.f32 %v1446_v61, %v693_v12  ;;  %1061 = vmatmul.mubr.msk.bf16.vlgmr.msra.gmra.mrb[4].mxu0 %vm383_vm1, %v719_v25 }
 0x24c   : > { %v709_v13 = vrot.slane %v685_v38, %v1385_v49 }
 0x24e   : > { %v714_v14 = vadd.f32 %v709_v13, %v698_v42  ;;  %v715_v15 = vadd.f32 %v709_v13, %v699_v37  ;;  %v716_v16 = vadd.f32 %v709_v13, %v700_v40  ;;  %v717_v17 = vadd.f32 %v709_v13, %v701_v31 }
 0x250   : > { %v720_v18 = vpack.c.bf16 %v715_v15, %v714_v14  ;;  %v721_v19 = vpack.c.bf16 %v717_v17, %v716_v16 }
 0x252   : > { %1064 = vmatprep.mubr.msk.bf16.mxu0 %vm383_vm1, %v720_v18 }
 0x253   : > { %1065 = vmatmul.mubr.msk.bf16.gmra.mrb[8].mxu0 %vm383_vm1, %v721_v19 }
 0x31e   : > { %v1062_v55 = vpop.f32.mrb[4].mxu0 }
 0x31f   : > { %v791_v61 = vpop.f32.mrb[5].mxu0  ;;  %v800_v0 = vadd.f32 %v1062_v55, %v965_v58 }
 0x320   : > { %v1063_v49 = vpop.f32.mrb[6].mxu0  ;;  %v792_v22 = vadd.f32 %v965_v58, %v791_v61 }
 0x321   : > { %v803_v20 = vadd.f32 %v1063_v49, %v965_v58  ;;  %v794_v21 = vpop.f32.mrb[7].mxu0 }
 0x322   : > { %v795_v23 = vadd.f32 %v965_v58, %v794_v21 }
 0x323   : > { %v1002_v28 = vpack.c.bf16 %v803_v20, %v800_v0 }
 0x324   : > { %v997_v30 = vpack.c.bf16 %v795_v23, %v792_v22 }
 0x325   : > { %1014 = vst [vmem:[%s245_s10 + $0x8] sm:$0xff] %v1002_v28  }
 0x326   : > { %998 = vst [vmem:[%s245_s10] sm:$0xff] %v997_v30   ;;  %v1066_v32 = vpop.f32.mrb[8].mxu0 }
 0x327   : > { %v807_v33 = vpop.f32.mrb[9].mxu0  ;;  %v816_v36 = vadd.f32 %v1066_v32, %v965_v58 }
 0x328   : > { %v1067_v35 = vpop.f32.mrb[10].mxu0  ;;  %v808_v44 = vadd.f32 %v965_v58, %v807_v33 }
 0x329   : > { %v819_v41 = vadd.f32 %v1067_v35, %v965_v58  ;;  %v810_v43 = vpop.f32.mrb[11].mxu0 }
 0x32a   : > { %v811_v45 = vadd.f32 %v965_v58, %v810_v43 }
 0x32b   : > { %v1012_v46 = vpack.c.bf16 %v819_v41, %v816_v36 }
 0x32c   : > { %v1007_v47 = vpack.c.bf16 %v811_v45, %v808_v44 }
 0x32d   : > { %1016 = vst [vmem:[%s245_s10 + $0x18] sm:$0xff] %v1012_v46  }
 0x32e   : > { %1015 = vst [vmem:[%s245_s10 + $0x10] sm:$0xff] %v1007_v47  }
 0x32f   : > { %1173 = shalt.err (!%p1170_p3)
}
 0x330   : > { %s1174_s20 = scalar_lea.hbm %s1505_s15, 512  ;;  %s1178_s29 = scalar_lea.hbm %s1556_s6, 1024 }
 0x331   : > { %p1175_p4 = scmp.ne.s32.totalorder %s1505_s15, %s1174_s20  ;;  %p1179_p9 = scmp.lt.u32.totalorder %s1505_s15, %s1556_s6 }
 0x332   : > { %p1180_p10 = scmp.lt.u32.totalorder %s1178_s29, %s1174_s20  ;;  %p1182_p12 = scmp.lt.u32.totalorder %s1174_s20, %s1505_s15 }
 0x333   : > { %p1176_p7 = pnand %p1175_p4, %p1300_p5 }
 0x334   : > { %p1181_p11 = por %p1180_p10, %p1179_p9 }
 0x335   : > { %p1177_p8 = pneg %p1176_p7 }
 0x336   : > { %p1183_p13 = por %p1182_p12, %p1181_p11 }
 0x338   : > { %p1184_p0 = pnand %p1183_p13, %p1177_p8 }
 0x33a   : > { %1187 = shalt.err (!%p1184_p0)
}
 0x33b   : > { %s1225_s12 = smov 64   ;;  %s1226_s13 = smov 4  }
 0x33c   : > { %1070 = dma.vmem_to_hbm [thread:$0]  (%p1300_p5), %s1500_s11, 512, %s1505_s15, %s1509_s16, %s1225_s12, %s1225_s12, %s1226_s13  }
 0x33d PF: > { %p1076_p1 = scmp.ge.s32.totalorder %s1222_s24, 2  ;;  %s891_s14 = sand.u32 1, %s1210_s21  }
 0x33e   : > { %s892_s25 = scalar_lea.sflag [#allocation3], %s891_s14 }
 0x33f   : > { %p1073_p2 = pnand %p1076_p1, %p1304_p6 }
 0x341   : > { %1205 = dma.done.wait (!%p1073_p2), %s892_s25, 512  }
 0x342   : > { %1207 = vsyncadd (!%p1073_p2), %s892_s25, 4294966784  ;;  %p16_p3 = scmp.ge.s32.totalorder %s1287_s27, 4   ;;  %s1559_s21 = smov %s1214_s22 }
 0x343   : > { %s1560_s22 = smov %s1218_s23  ;;  %s1561_s23 = smov %s1298_s30 }
 0x344   : > { %s1562_s24 = smov %s1287_s27  ;;  %18 = sbr.rel (!%p16_p3) target bundleno = 3 (0x3), region = 80 }
 0x34b   :  { %897 = vsyncpa [#allocation3], 1 }
 0x34c   :  { %899 = vsyncpa [#allocation3 + $0x1], 1 }

</bundles_post_ra>
